<compile_context>
chip_gen: v5e
topology: v5e:2x2
jax: 0.10.0
libtpu: 0.0.40
codegen_flags: <defaults>
</compile_context>

<pallas_src>
import numpy as np
import jax
import jax.numpy as jnp
from jax.experimental import pallas as pl
from jax.experimental.pallas import tpu as pltpu

EPS = 1e-5
NEG_SLOPE = 0.01          # nn.LeakyReLU default
HI = jax.lax.Precision.HIGHEST
LANE = 128


def _lrelu(x):
    return jnp.where(x >= 0, x, NEG_SLOPE * x)


def _round_up(x, m):
    return ((x + m - 1) // m) * m


def _pick_tile(m):
    # Row tile for the matmul stages; M is padded up to a multiple of it.
    for t in (512, 256, 128, 64, 32, 16):
        if m >= t:
            return t
    return 16


def _pick_div_tile(m, cands=(512, 256, 128, 64, 32, 16, 8)):
    # Exact divisor tile (fallback = full extent, only hit for tiny m).
    for t in cands:
        if m >= t and m % t == 0:
            return t
    return m


def _compiler_params(blocks):
    """blocks: list of (shape, dtype). Generation-gated VMEM limit."""
    nbytes = sum(int(np.prod(s)) * np.dtype(d).itemsize for s, d in blocks)
    need = 2 * nbytes + (4 << 20)                 # double-buffered + headroom
    try:
        phys = pltpu.get_tpu_info().vmem_capacity_bytes
    except Exception:
        phys = 64 << 20
    ceiling = (44 << 20) if phys <= (64 << 20) else (60 << 20)
    limit = int(min(ceiling, max(16 << 20, need)))
    return pltpu.CompilerParams(dimension_semantics=("parallel",),
                                vmem_limit_bytes=limit)


# ---------------- stage 1: conv1 + 1x1 shortcut (one bf16 matmul) + bn1 stats
def _make_stage1(Cout):
    def kernel(p1_ref, w_ref, s1_ref, sum_ref, ssq_ref):
        acc = jnp.dot(p1_ref[...], w_ref[...],
                      preferred_element_type=jnp.float32)     # [tm, 2*Cout] f32
        s1_ref[...] = acc                         # cols [0,Cout)=conv1, rest=res
        c1 = acc[:, :Cout]
        sum_ref[0, :, :] = jnp.sum(c1, axis=0, keepdims=True)
        ssq_ref[0, :, :] = jnp.sum(c1 * c1, axis=0, keepdims=True)
    return kernel


# -------- stage 2: bn1 affine + lrelu + halo mask + conv2 matmul + bn2 stats -
def _make_stage2(Cout, Ho, Wo, K2, K2p):
    def kernel(p2_ref, oi_ref, oj_ref, sc_ref, sh_ref, w2_ref,
               c2_ref, sum_ref, ssq_ref):
        x = p2_ref[...].astype(jnp.float32)                    # [tm, K2p]
        y = _lrelu(x * sc_ref[...] + sh_ref[...])              # bn1 affine+lrelu
        # Halo / padding mask built from an iota (no DMA'd mask tensor).
        # Column l -> tap (kh, kw) with l = (kh*3+kw)*Cout + c  (compares only,
        # no vector integer div).  Row (oi, oj) comes from tiny per-row tables;
        # padded rows carry an out-of-range sentinel so they mask to zero.
        l = jax.lax.broadcasted_iota(jnp.int32, (1, K2p), 1)
        kh = (l >= 3 * Cout).astype(jnp.int32) + (l >= 6 * Cout).astype(jnp.int32)
        lrem = l - 3 * Cout * kh
        kw = (lrem >= Cout).astype(jnp.int32) + (lrem >= 2 * Cout).astype(jnp.int32)
        oi = oi_ref[...]                                       # [tm, 1] int32
        oj = oj_ref[...]                                       # [tm, 1] int32
        valid = ((l < K2)
                 & (oi + kh >= 1) & (oi + kh <= Ho)
                 & (oj + kw >= 1) & (oj + kw <= Wo))
        y = jnp.where(valid, y, 0.0)
        acc = jnp.dot(y.astype(jnp.bfloat16), w2_ref[...],
                      preferred_element_type=jnp.float32)      # [tm, Cout] f32
        c2_ref[...] = acc
        sum_ref[0, :, :] = jnp.sum(acc, axis=0, keepdims=True)
        ssq_ref[0, :, :] = jnp.sum(acc * acc, axis=0, keepdims=True)
    return kernel


# ---------------- stage 3: bn2 affine + residual add + lrelu (lane-packed) ---
def _make_stage3():
    def kernel(c2_ref, res_ref, sc_ref, sh_ref, o_ref):
        o = c2_ref[...] * sc_ref[...] + sh_ref[...] + res_ref[...]
        o_ref[...] = _lrelu(o)
    return kernel


def improved_conv_block(x_nchw, w1, w2, wr, g1, b1, g2, b2):
    N, Cin, H, W = x_nchw.shape
    Cout = w1.shape[0]
    Ho = (H + 2 - 3) // 2 + 1
    Wo = (W + 2 - 3) // 2 + 1
    M = N * Ho * Wo
    K1 = 9 * Cin
    K1p = _round_up(K1, LANE)
    K2 = 9 * Cout
    K2p = _round_up(K2, LANE)
    f32, bf16 = jnp.float32, jnp.bfloat16

    # Robust row tiling: pad M to a tile multiple; keep the grid count even.
    tm = _pick_tile(M)
    Mp = _round_up(M, tm)
    T = Mp // tm
    if T > 1 and T % 2 == 1:
        Mp += tm
        T += 1

    # ---- conv1 im2col (taps folded into K), bf16 ---------------------------
    x = jnp.transpose(x_nchw, (0, 2, 3, 1)).astype(f32)                  # NHWC
    x_pad = jnp.pad(x, ((0, 0), (1, 1), (1, 1), (0, 0)))
    cols = [x_pad[:, kh:kh + 2 * Ho:2, kw:kw + 2 * Wo:2, :].reshape(M, Cin)
            for kh in range(3) for kw in range(3)]
    p1 = jnp.concatenate(cols, axis=1)                                   # [M, K1]
    p1 = jnp.pad(p1, ((0, Mp - M), (0, K1p - K1))).astype(bf16)

    # Fused weight: cols [0,Cout)=conv1, cols [Cout,2*Cout)=1x1 shortcut
    # (the shortcut input is the centre tap rows 4*Cin:5*Cin of the im2col).
    w1t = jnp.transpose(w1, (2, 3, 1, 0)).reshape(K1, Cout)
    wrt = jnp.transpose(wr[:, :, 0, 0], (1, 0))                          # [Cin, Cout]
    wfull = jnp.zeros((K1p, 2 * Cout), f32)
    wfull = wfull.at[:K1, :Cout].set(w1t.astype(f32))
    wfull = wfull.at[4 * Cin:5 * Cin, Cout:].set(wrt.astype(f32))
    wfull = wfull.astype(bf16)

    g1f, b1f = g1.astype(f32), b1.astype(f32)
    g2f, b2f = g2.astype(f32), b2.astype(f32)

    # ---- stage 1 ------------------------------------------------------------
    s1_blocks = [((tm, K1p), bf16), ((K1p, 2 * Cout), bf16),
                 ((tm, 2 * Cout), f32), ((1, 1, Cout), f32), ((1, 1, Cout), f32)]
    s1, sum1, ssq1 = pl.pallas_call(
        _make_stage1(Cout),
        grid=(T,),
        in_specs=[pl.BlockSpec((tm, K1p), lambda i: (i, 0)),
                  pl.BlockSpec((K1p, 2 * Cout), lambda i: (0, 0))],
        out_specs=[pl.BlockSpec((tm, 2 * Cout), lambda i: (i, 0)),
                   pl.BlockSpec((1, 1, Cout), lambda i: (i, 0, 0)),
                   pl.BlockSpec((1, 1, Cout), lambda i: (i, 0, 0))],
        out_shape=[jax.ShapeDtypeStruct((Mp, 2 * Cout), f32),
                   jax.ShapeDtypeStruct((T, 1, Cout), f32),
                   jax.ShapeDtypeStruct((T, 1, Cout), f32)],
        compiler_params=_compiler_params(s1_blocks),
    )(p1, wfull)

    # bn1 parameters from one-pass partials (tiny wrapper glue; zero-padded
    # rows contribute nothing to the sums so dividing by the true M is exact).
    s1sum = jnp.sum(sum1, axis=(0, 1))
    s1ssq = jnp.sum(ssq1, axis=(0, 1))
    mean1 = s1sum / M
    var1 = jnp.maximum(s1ssq / M - mean1 * mean1, 0.0)
    rstd1 = jax.lax.rsqrt(var1 + EPS)
    scale1 = g1f * rstd1
    shift1 = b1f - mean1 * scale1

    # conv2 im2col on the *narrow* pre-BN conv1 output (bn1 affine + lrelu is
    # applied per tap in-kernel, so no 128-wide halo-padded tensor in HBM).
    c1 = s1[:M, :Cout]
    c1_halo = jnp.pad(c1.reshape(N, Ho, Wo, Cout),
                      ((0, 0), (1, 1), (1, 1), (0, 0)))
    taps = [c1_halo[:, kh:kh + Ho, kw:kw + Wo, :].reshape(M, Cout)
            for kh in range(3) for kw in range(3)]
    p2 = jnp.concatenate(taps, axis=1)                                   # [M, K2]
    p2 = jnp.pad(p2, ((0, Mp - M), (0, K2p - K2))).astype(bf16)

    # Per-column bn1 scale/shift (tiled per tap), zero on the K padding.
    sc_cols = jnp.zeros((1, K2p), f32).at[0, :K2].set(jnp.tile(scale1, 9))
    sh_cols = jnp.zeros((1, K2p), f32).at[0, :K2].set(jnp.tile(shift1, 9))

    # conv2 weight, taps folded into K: [K2p, Cout], bf16.
    w2t = jnp.transpose(w2, (2, 3, 1, 0)).reshape(K2, Cout)
    w2f = jnp.zeros((K2p, Cout), f32).at[:K2, :].set(w2t.astype(f32)).astype(bf16)

    # Tiny per-row (oi, oj) tables (host constants); padded rows get an
    # out-of-range sentinel so the in-kernel mask zeroes them.
    g_idx = np.arange(Mp)
    rin = g_idx % (Ho * Wo)
    oi_np = (rin // Wo).astype(np.int32)
    oj_np = (rin % Wo).astype(np.int32)
    oi_np[g_idx >= M] = -(10 ** 6)
    oj_np[g_idx >= M] = -(10 ** 6)
    row_oi = jnp.asarray(oi_np).reshape(Mp, 1)
    row_oj = jnp.asarray(oj_np).reshape(Mp, 1)

    # ---- stage 2 ------------------------------------------------------------
    s2_blocks = [((tm, K2p), bf16), ((tm, 1), np.int32), ((tm, 1), np.int32),
                 ((1, K2p), f32), ((1, K2p), f32), ((K2p, Cout), bf16),
                 ((tm, Cout), f32), ((1, 1, Cout), f32), ((1, 1, Cout), f32)]
    c2, sum2, ssq2 = pl.pallas_call(
        _make_stage2(Cout, Ho, Wo, K2, K2p),
        grid=(T,),
        in_specs=[pl.BlockSpec((tm, K2p), lambda i: (i, 0)),
                  pl.BlockSpec((tm, 1), lambda i: (i, 0)),
                  pl.BlockSpec((tm, 1), lambda i: (i, 0)),
                  pl.BlockSpec((1, K2p), lambda i: (0, 0)),
                  pl.BlockSpec((1, K2p), lambda i: (0, 0)),
                  pl.BlockSpec((K2p, Cout), lambda i: (0, 0))],
        out_specs=[pl.BlockSpec((tm, Cout), lambda i: (i, 0)),
                   pl.BlockSpec((1, 1, Cout), lambda i: (i, 0, 0)),
                   pl.BlockSpec((1, 1, Cout), lambda i: (i, 0, 0))],
        out_shape=[jax.ShapeDtypeStruct((Mp, Cout), f32),
                   jax.ShapeDtypeStruct((T, 1, Cout), f32),
                   jax.ShapeDtypeStruct((T, 1, Cout), f32)],
        compiler_params=_compiler_params(s2_blocks),
    )(p2, row_oi, row_oj, sc_cols, sh_cols, w2f)

    s2sum = jnp.sum(sum2, axis=(0, 1))
    s2ssq = jnp.sum(ssq2, axis=(0, 1))
    mean2 = s2sum / M
    var2 = jnp.maximum(s2ssq / M - mean2 * mean2, 0.0)
    rstd2 = jax.lax.rsqrt(var2 + EPS)
    scale2 = g2f * rstd2
    shift2 = b2f - mean2 * scale2

    # ---- stage 3 (lane-packed elementwise pass) -----------------------------
    pack = 1
    for p in (16, 8, 4, 2):
        if p * Cout <= LANE and Mp % p == 0:
            pack = p
            break
    lanes = pack * Cout
    rows3 = Mp // pack
    c2_pk = c2.reshape(rows3, lanes)                  # free row-major repack
    res_pk = s1[:, Cout:].reshape(rows3, lanes)       # 1x1-shortcut columns
    sc3 = jnp.tile(scale2, pack).reshape(1, lanes)
    sh3 = jnp.tile(shift2, pack).reshape(1, lanes)
    tr3 = _pick_div_tile(rows3)
    T3 = rows3 // tr3

    s3_blocks = [((tr3, lanes), f32), ((tr3, lanes), f32),
                 ((1, lanes), f32), ((1, lanes), f32), ((tr3, lanes), f32)]
    out_pk = pl.pallas_call(
        _make_stage3(),
        grid=(T3,),
        in_specs=[pl.BlockSpec((tr3, lanes), lambda i: (i, 0)),
                  pl.BlockSpec((tr3, lanes), lambda i: (i, 0)),
                  pl.BlockSpec((1, lanes), lambda i: (0, 0)),
                  pl.BlockSpec((1, lanes), lambda i: (0, 0))],
        out_specs=pl.BlockSpec((tr3, lanes), lambda i: (i, 0)),
        out_shape=jax.ShapeDtypeStruct((rows3, lanes), f32),
        compiler_params=_compiler_params(s3_blocks),
    )(c2_pk, res_pk, sc3, sh3)

    out = out_pk.reshape(Mp, Cout)[:M].reshape(N, Ho, Wo, Cout)
    return jnp.transpose(out, (0, 3, 1, 2))                              # NCHW


def reference(x, w1, w2, wr, g1, b1, g2, b2):
    # Pure-JAX f32 reference mirroring the PyTorch forward (training-mode BN).
    def conv(t, w, stride, pad):
        return jax.lax.conv_general_dilated(
            t, w, (stride, stride), ((pad, pad), (pad, pad)),
            dimension_numbers=('NCHW', 'OIHW', 'NCHW'), precision=HI)

    def bn(t, g, b):
        m = jnp.mean(t, axis=(0, 2, 3), keepdims=True)
        v = jnp.mean((t - m) ** 2, axis=(0, 2, 3), keepdims=True)
        return (t - m) * jax.lax.rsqrt(v + EPS) * g.reshape(1, -1, 1, 1) \
            + b.reshape(1, -1, 1, 1)

    res = conv(x, wr, 2, 0)
    out = _lrelu(bn(conv(x, w1, 2, 1), g1, b1))
    out = bn(conv(out, w2, 1, 1), g2, b2)
    return _lrelu(out + res)


if __name__ == "__main__":
    N, Cin, Cout, H, W = 2, 4, 8, 16, 16
    key = jax.random.PRNGKey(0)
    kx, k1, k2, k3, k4, k5, k6, k7 = jax.random.split(key, 8)

    x = jax.random.normal(kx, (N, Cin, H, W), jnp.float32)
    w1 = 0.1 * jax.random.normal(k1, (Cout, Cin, 3, 3), jnp.float32)   # conv1
    w2 = 0.1 * jax.random.normal(k2, (Cout, Cout, 3, 3), jnp.float32)  # conv2
    wr = 0.1 * jax.random.normal(k3, (Cout, Cin, 1, 1), jnp.float32)   # 1x1 shortcut
    g1 = 1.0 + 0.1 * jax.random.normal(k4, (Cout,), jnp.float32)       # bn1 gamma
    b1 = 0.1 * jax.random.normal(k5, (Cout,), jnp.float32)             # bn1 beta
    g2 = 1.0 + 0.1 * jax.random.normal(k6, (Cout,), jnp.float32)       # bn2 gamma
    b2 = 0.1 * jax.random.normal(k7, (Cout,), jnp.float32)             # bn2 beta

    out = jax.jit(improved_conv_block)(x, w1, w2, wr, g1, b1, g2, b2)
    out = jax.block_until_ready(out)
    assert out.shape == (N, Cout, H // 2, W // 2)

    ref = reference(x, w1, w2, wr, g1, b1, g2, b2)
    # bf16 MXU operands (f32 accumulation) => 2e-2 tolerance vs the f32 reference.
    np.testing.assert_allclose(np.asarray(out), np.asarray(ref),
                               atol=2e-2, rtol=2e-2)
    print("KERNEL_OK")
</pallas_src>

<mosaic_0001>
module attributes {stable_mosaic.version = 11 : i64} {
  func.func @kernel(%arg0: i32, %arg1: memref<128x128xbf16, #tpu.memory_space<vmem>>, %arg2: memref<128x16xbf16, #tpu.memory_space<vmem>>, %arg3: memref<128x16xf32, #tpu.memory_space<vmem>>, %arg4: memref<1x1x8xf32, #tpu.memory_space<vmem>>, %arg5: memref<1x1x8xf32, #tpu.memory_space<vmem>>) attributes {dimension_semantics = [#tpu.dimension_semantics<parallel>], iteration_bounds = array<i64: 1>, scalar_prefetch = 0 : i64, scratch_operands = 0 : i64, tpu.core_type = #tpu.core_type<tc>, window_params = [{transform_indices = @transform_0, window_bounds = array<i64: 128, 128>}, {pipeline_mode = #tpu.pipeline_mode<synchronous>, transform_indices = @transform_1, window_bounds = array<i64: 128, 16>}, {transform_indices = @transform_2, window_bounds = array<i64: 128, 16>}, {transform_indices = @transform_3, window_bounds = array<i64: 1, 1, 8>}, {transform_indices = @transform_4, window_bounds = array<i64: 1, 1, 8>}]} {
    %c0 = arith.constant 0 : index
    %c0_0 = arith.constant 0 : index
    %0 = vector.load %arg1[%c0, %c0_0] : memref<128x128xbf16, #tpu.memory_space<vmem>>, vector<128x128xbf16>
    %c0_1 = arith.constant 0 : index
    %c0_2 = arith.constant 0 : index
    %1 = vector.load %arg2[%c0_1, %c0_2] : memref<128x16xbf16, #tpu.memory_space<vmem>>, vector<128x16xbf16>
    %cst = arith.constant dense<0.000000e+00> : vector<128x16xf32>
    %2 = tpu.matmul %0, %1, %cst {dimension_numbers = #tpu.dot_dimension_numbers<[1], [0], [0], [1], [0, 0, 1, 1], [], []>} : vector<128x128xbf16>, vector<128x16xbf16>, vector<128x16xf32> -> vector<128x16xf32>
    %c0_3 = arith.constant 0 : index
    %c0_4 = arith.constant 0 : index
    %3 = vector.load %arg3[%c0_3, %c0_4] : memref<128x16xf32, #tpu.memory_space<vmem>>, vector<128x16xf32>
    tpu.vector_store %arg3[%c0_3, %c0_4], %2 {strides = array<i32>} : memref<128x16xf32, #tpu.memory_space<vmem>>, vector<128x16xf32>,
    %4 = vector.extract_strided_slice %2 {offsets = [0, 0], sizes = [128, 8], strides = [1, 1]} : vector<128x16xf32> to vector<128x8xf32>
    %cst_5 = arith.constant dense<0.000000e+00> : vector<8xf32>
    %5 = vector.multi_reduction <add>, %4, %cst_5 [0] : vector<128x8xf32> to vector<8xf32>
    %6 = vector.shape_cast %5 : vector<8xf32> to vector<1x8xf32>
    %c0_6 = arith.constant 0 : index
    %c0_7 = arith.constant 0 : index
    %c0_8 = arith.constant 0 : index
    %7 = vector.load %arg4[%c0_6, %c0_7, %c0_8] : memref<1x1x8xf32, #tpu.memory_space<vmem>>, vector<1x1x8xf32>
    %8 = vector.shape_cast %7 : vector<1x1x8xf32> to vector<1x8xf32>
    %9 = vector.shape_cast %6 : vector<1x8xf32> to vector<1x1x8xf32>
    tpu.vector_store %arg4[%c0_6, %c0_7, %c0_8], %9 {strides = array<i32>} : memref<1x1x8xf32, #tpu.memory_space<vmem>>, vector<1x1x8xf32>,
    %10 = arith.mulf %4, %4 : vector<128x8xf32>
    %cst_9 = arith.constant dense<0.000000e+00> : vector<8xf32>
    %11 = vector.multi_reduction <add>, %10, %cst_9 [0] : vector<128x8xf32> to vector<8xf32>
    %12 = vector.shape_cast %11 : vector<8xf32> to vector<1x8xf32>
    %c0_10 = arith.constant 0 : index
    %c0_11 = arith.constant 0 : index
    %c0_12 = arith.constant 0 : index
    %13 = vector.load %arg5[%c0_10, %c0_11, %c0_12] : memref<1x1x8xf32, #tpu.memory_space<vmem>>, vector<1x1x8xf32>
    %14 = vector.shape_cast %13 : vector<1x1x8xf32> to vector<1x8xf32>
    %15 = vector.shape_cast %12 : vector<1x8xf32> to vector<1x1x8xf32>
    tpu.vector_store %arg5[%c0_10, %c0_11, %c0_12], %15 {strides = array<i32>} : memref<1x1x8xf32, #tpu.memory_space<vmem>>, vector<1x1x8xf32>,
    return
  }
  func.func @transform_0(%arg0: i32) -> (i32, i32) {
    %c0_i32 = arith.constant 0 : i32
    %c0_i32_0 = arith.constant 0 : i32
    return %arg0, %c0_i32 : i32, i32
  }
  func.func @transform_1(%arg0: i32) -> (i32, i32) {
    %c0_i32 = arith.constant 0 : i32
    %c0_i32_0 = arith.constant 0 : i32
    %c0_i32_1 = arith.constant 0 : i32
    return %c0_i32, %c0_i32_0 : i32, i32
  }
  func.func @transform_2(%arg0: i32) -> (i32, i32) {
    %c0_i32 = arith.constant 0 : i32
    %c0_i32_0 = arith.constant 0 : i32
    return %arg0, %c0_i32 : i32, i32
  }
  func.func @transform_3(%arg0: i32) -> (i32, i32, i32) {
    %c0_i32 = arith.constant 0 : i32
    %c0_i32_0 = arith.constant 0 : i32
    %c0_i32_1 = arith.constant 0 : i32
    return %arg0, %c0_i32, %c0_i32_0 : i32, i32, i32
  }
  func.func @transform_4(%arg0: i32) -> (i32, i32, i32) {
    %c0_i32 = arith.constant 0 : i32
    %c0_i32_0 = arith.constant 0 : i32
    %c0_i32_1 = arith.constant 0 : i32
    return %arg0, %c0_i32, %c0_i32_0 : i32, i32, i32
  }
}

module attributes {stable_mosaic.version = 11 : i64} {
  func.func @kernel(%arg0: i32, %arg1: memref<128x128xbf16, #tpu.memory_space<vmem>>, %arg2: memref<128x1xi32, #tpu.memory_space<vmem>>, %arg3: memref<128x1xi32, #tpu.memory_space<vmem>>, %arg4: memref<1x128xf32, #tpu.memory_space<vmem>>, %arg5: memref<1x128xf32, #tpu.memory_space<vmem>>, %arg6: memref<128x8xbf16, #tpu.memory_space<vmem>>, %arg7: memref<128x8xf32, #tpu.memory_space<vmem>>, %arg8: memref<1x1x8xf32, #tpu.memory_space<vmem>>, %arg9: memref<1x1x8xf32, #tpu.memory_space<vmem>>) attributes {dimension_semantics = [#tpu.dimension_semantics<parallel>], iteration_bounds = array<i64: 1>, scalar_prefetch = 0 : i64, scratch_operands = 0 : i64, tpu.core_type = #tpu.core_type<tc>, window_params = [{transform_indices = @transform_0, window_bounds = array<i64: 128, 128>}, {transform_indices = @transform_1, window_bounds = array<i64: 128, 1>}, {transform_indices = @transform_2, window_bounds = array<i64: 128, 1>}, {pipeline_mode = #tpu.pipeline_mode<synchronous>, transform_indices = @transform_3, window_bounds = array<i64: 1, 128>}, {pipeline_mode = #tpu.pipeline_mode<synchronous>, transform_indices = @transform_4, window_bounds = array<i64: 1, 128>}, {pipeline_mode = #tpu.pipeline_mode<synchronous>, transform_indices = @transform_5, window_bounds = array<i64: 128, 8>}, {transform_indices = @transform_6, window_bounds = array<i64: 128, 8>}, {transform_indices = @transform_7, window_bounds = array<i64: 1, 1, 8>}, {transform_indices = @transform_8, window_bounds = array<i64: 1, 1, 8>}]} {
    %c0 = arith.constant 0 : index
    %c0_0 = arith.constant 0 : index
    %0 = vector.load %arg1[%c0, %c0_0] : memref<128x128xbf16, #tpu.memory_space<vmem>>, vector<128x128xbf16>
    %1 = arith.extf %0 : vector<128x128xbf16> to vector<128x128xf32>
    %c0_1 = arith.constant 0 : index
    %c0_2 = arith.constant 0 : index
    %2 = vector.load %arg4[%c0_1, %c0_2] : memref<1x128xf32, #tpu.memory_space<vmem>>, vector<1x128xf32>
    %3 = vector.broadcast %2 : vector<1x128xf32> to vector<128x128xf32>
    %4 = arith.mulf %1, %3 : vector<128x128xf32>
    %c0_3 = arith.constant 0 : index
    %c0_4 = arith.constant 0 : index
    %5 = vector.load %arg5[%c0_3, %c0_4] : memref<1x128xf32, #tpu.memory_space<vmem>>, vector<1x128xf32>
    %6 = vector.broadcast %5 : vector<1x128xf32> to vector<128x128xf32>
    %7 = arith.addf %4, %6 : vector<128x128xf32>
    %cst = arith.constant 0.000000e+00 : f32
    %8 = vector.broadcast %cst : f32 to vector<128x128xf32>
    %9 = arith.cmpf oge, %7, %8 : vector<128x128xf32>
    %cst_5 = arith.constant 0.00999999977 : f32
    %10 = vector.broadcast %cst_5 : f32 to vector<128x128xf32>
    %11 = arith.mulf %10, %7 : vector<128x128xf32>
    %12 = arith.select %9, %7, %11 : vector<128x128xi1>, vector<128x128xf32>
    %13 = tpu.iota {dimensions = array<i32: 1>} : vector<1x128xi32>
    %c24_i32 = arith.constant 24 : i32
    %14 = vector.broadcast %c24_i32 : i32 to vector<1x128xi32>
    %15 = arith.cmpi sge, %13, %14 : vector<1x128xi32>
    %16 = arith.extui %15 : vector<1x128xi1> to vector<1x128xi32>
    %c48_i32 = arith.constant 48 : i32
    %17 = vector.broadcast %c48_i32 : i32 to vector<1x128xi32>
    %18 = arith.cmpi sge, %13, %17 : vector<1x128xi32>
    %19 = arith.extui %18 : vector<1x128xi1> to vector<1x128xi32>
    %20 = arith.addi %16, %19 : vector<1x128xi32>
    %c24_i32_6 = arith.constant 24 : i32
    %21 = vector.broadcast %c24_i32_6 : i32 to vector<1x128xi32>
    %22 = arith.muli %21, %20 : vector<1x128xi32>
    %23 = arith.subi %13, %22 : vector<1x128xi32>
    %c8_i32 = arith.constant 8 : i32
    %24 = vector.broadcast %c8_i32 : i32 to vector<1x128xi32>
    %25 = arith.cmpi sge, %23, %24 : vector<1x128xi32>
    %26 = arith.extui %25 : vector<1x128xi1> to vector<1x128xi32>
    %c16_i32 = arith.constant 16 : i32
    %27 = vector.broadcast %c16_i32 : i32 to vector<1x128xi32>
    %28 = arith.cmpi sge, %23, %27 : vector<1x128xi32>
    %29 = arith.extui %28 : vector<1x128xi1> to vector<1x128xi32>
    %30 = arith.addi %26, %29 : vector<1x128xi32>
    %c0_7 = arith.constant 0 : index
    %c0_8 = arith.constant 0 : index
    %31 = vector.load %arg2[%c0_7, %c0_8] : memref<128x1xi32, #tpu.memory_space<vmem>>, vector<128x1xi32>
    %c0_9 = arith.constant 0 : index
    %c0_10 = arith.constant 0 : index
    %32 = vector.load %arg3[%c0_9, %c0_10] : memref<128x1xi32, #tpu.memory_space<vmem>>, vector<128x1xi32>
    %c72_i32 = arith.constant 72 : i32
    %33 = vector.broadcast %c72_i32 : i32 to vector<1x128xi32>
    %34 = arith.cmpi slt, %13, %33 : vector<1x128xi32>
    %35 = vector.broadcast %31 : vector<128x1xi32> to vector<128x128xi32>
    %36 = vector.broadcast %20 : vector<1x128xi32> to vector<128x128xi32>
    %37 = arith.addi %35, %36 : vector<128x128xi32>
    %c1_i32 = arith.constant 1 : i32
    %38 = vector.broadcast %c1_i32 : i32 to vector<128x128xi32>
    %39 = arith.cmpi sge, %37, %38 : vector<128x128xi32>
    %40 = vector.broadcast %34 : vector<1x128xi1> to vector<128x128xi1>
    %41 = arith.andi %40, %39 : vector<128x128xi1>
    %42 = vector.broadcast %31 : vector<128x1xi32> to vector<128x128xi32>
    %43 = vector.broadcast %20 : vector<1x128xi32> to vector<128x128xi32>
    %44 = arith.addi %42, %43 : vector<128x128xi32>
    %c8_i32_11 = arith.constant 8 : i32
    %45 = vector.broadcast %c8_i32_11 : i32 to vector<128x128xi32>
    %46 = arith.cmpi sle, %44, %45 : vector<128x128xi32>
    %47 = arith.andi %41, %46 : vector<128x128xi1>
    %48 = vector.broadcast %32 : vector<128x1xi32> to vector<128x128xi32>
    %49 = vector.broadcast %30 : vector<1x128xi32> to vector<128x128xi32>
    %50 = arith.addi %48, %49 : vector<128x128xi32>
    %c1_i32_12 = arith.constant 1 : i32
    %51 = vector.broadcast %c1_i32_12 : i32 to vector<128x128xi32>
    %52 = arith.cmpi sge, %50, %51 : vector<128x128xi32>
    %53 = arith.andi %47, %52 : vector<128x128xi1>
    %54 = vector.broadcast %32 : vector<128x1xi32> to vector<128x128xi32>
    %55 = vector.broadcast %30 : vector<1x128xi32> to vector<128x128xi32>
    %56 = arith.addi %54, %55 : vector<128x128xi32>
    %c8_i32_13 = arith.constant 8 : i32
    %57 = vector.broadcast %c8_i32_13 : i32 to vector<128x128xi32>
    %58 = arith.cmpi sle, %56, %57 : vector<128x128xi32>
    %59 = arith.andi %53, %58 : vector<128x128xi1>
    %cst_14 = arith.constant 0.000000e+00 : f32
    %60 = vector.broadcast %cst_14 : f32 to vector<128x128xf32>
    %61 = arith.select %59, %12, %60 : vector<128x128xi1>, vector<128x128xf32>
    %62 = arith.truncf %61 : vector<128x128xf32> to vector<128x128xbf16>
    %c0_15 = arith.constant 0 : index
    %c0_16 = arith.constant 0 : index
    %63 = vector.load %arg6[%c0_15, %c0_16] : memref<128x8xbf16, #tpu.memory_space<vmem>>, vector<128x8xbf16>
    %cst_17 = arith.constant dense<0.000000e+00> : vector<128x8xf32>
    %64 = tpu.matmul %62, %63, %cst_17 {dimension_numbers = #tpu.dot_dimension_numbers<[1], [0], [0], [1], [0, 0, 1, 1], [], []>} : vector<128x128xbf16>, vector<128x8xbf16>, vector<128x8xf32> -> vector<128x8xf32>
    %c0_18 = arith.constant 0 : index
    %c0_19 = arith.constant 0 : index
    %65 = vector.load %arg7[%c0_18, %c0_19] : memref<128x8xf32, #tpu.memory_space<vmem>>, vector<128x8xf32>
    tpu.vector_store %arg7[%c0_18, %c0_19], %64 {strides = array<i32>} : memref<128x8xf32, #tpu.memory_space<vmem>>, vector<128x8xf32>,
    %cst_20 = arith.constant dense<0.000000e+00> : vector<8xf32>
    %66 = vector.multi_reduction <add>, %64, %cst_20 [0] : vector<128x8xf32> to vector<8xf32>
    %67 = vector.shape_cast %66 : vector<8xf32> to vector<1x8xf32>
    %c0_21 = arith.constant 0 : index
    %c0_22 = arith.constant 0 : index
    %c0_23 = arith.constant 0 : index
    %68 = vector.load %arg8[%c0_21, %c0_22, %c0_23] : memref<1x1x8xf32, #tpu.memory_space<vmem>>, vector<1x1x8xf32>
    %69 = vector.shape_cast %68 : vector<1x1x8xf32> to vector<1x8xf32>
    %70 = vector.shape_cast %67 : vector<1x8xf32> to vector<1x1x8xf32>
    tpu.vector_store %arg8[%c0_21, %c0_22, %c0_23], %70 {strides = array<i32>} : memref<1x1x8xf32, #tpu.memory_space<vmem>>, vector<1x1x8xf32>,
    %71 = arith.mulf %64, %64 : vector<128x8xf32>
    %cst_24 = arith.constant dense<0.000000e+00> : vector<8xf32>
    %72 = vector.multi_reduction <add>, %71, %cst_24 [0] : vector<128x8xf32> to vector<8xf32>
    %73 = vector.shape_cast %72 : vector<8xf32> to vector<1x8xf32>
    %c0_25 = arith.constant 0 : index
    %c0_26 = arith.constant 0 : index
    %c0_27 = arith.constant 0 : index
    %74 = vector.load %arg9[%c0_25, %c0_26, %c0_27] : memref<1x1x8xf32, #tpu.memory_space<vmem>>, vector<1x1x8xf32>
    %75 = vector.shape_cast %74 : vector<1x1x8xf32> to vector<1x8xf32>
    %76 = vector.shape_cast %73 : vector<1x8xf32> to vector<1x1x8xf32>
    tpu.vector_store %arg9[%c0_25, %c0_26, %c0_27], %76 {strides = array<i32>} : memref<1x1x8xf32, #tpu.memory_space<vmem>>, vector<1x1x8xf32>,
    return
  }
  func.func @transform_0(%arg0: i32) -> (i32, i32) {
    %c0_i32 = arith.constant 0 : i32
    %c0_i32_0 = arith.constant 0 : i32
    return %arg0, %c0_i32 : i32, i32
  }
  func.func @transform_1(%arg0: i32) -> (i32, i32) {
    %c0_i32 = arith.constant 0 : i32
    %c0_i32_0 = arith.constant 0 : i32
    return %arg0, %c0_i32 : i32, i32
  }
  func.func @transform_2(%arg0: i32) -> (i32, i32) {
    %c0_i32 = arith.constant 0 : i32
    %c0_i32_0 = arith.constant 0 : i32
    return %arg0, %c0_i32 : i32, i32
  }
  func.func @transform_3(%arg0: i32) -> (i32, i32) {
    %c0_i32 = arith.constant 0 : i32
    %c0_i32_0 = arith.constant 0 : i32
    %c0_i32_1 = arith.constant 0 : i32
    return %c0_i32, %c0_i32_0 : i32, i32
  }
  func.func @transform_4(%arg0: i32) -> (i32, i32) {
    %c0_i32 = arith.constant 0 : i32
    %c0_i32_0 = arith.constant 0 : i32
    %c0_i32_1 = arith.constant 0 : i32
    return %c0_i32, %c0_i32_0 : i32, i32
  }
  func.func @transform_5(%arg0: i32) -> (i32, i32) {
    %c0_i32 = arith.constant 0 : i32
    %c0_i32_0 = arith.constant 0 : i32
    %c0_i32_1 = arith.constant 0 : i32
    return %c0_i32, %c0_i32_0 : i32, i32
  }
  func.func @transform_6(%arg0: i32) -> (i32, i32) {
    %c0_i32 = arith.constant 0 : i32
    %c0_i32_0 = arith.constant 0 : i32
    return %arg0, %c0_i32 : i32, i32
  }
  func.func @transform_7(%arg0: i32) -> (i32, i32, i32) {
    %c0_i32 = arith.constant 0 : i32
    %c0_i32_0 = arith.constant 0 : i32
    %c0_i32_1 = arith.constant 0 : i32
    return %arg0, %c0_i32, %c0_i32_0 : i32, i32, i32
  }
  func.func @transform_8(%arg0: i32) -> (i32, i32, i32) {
    %c0_i32 = arith.constant 0 : i32
    %c0_i32_0 = arith.constant 0 : i32
    %c0_i32_1 = arith.constant 0 : i32
    return %arg0, %c0_i32, %c0_i32_0 : i32, i32, i32
  }
}

module attributes {stable_mosaic.version = 11 : i64} {
  func.func @kernel(%arg0: i32, %arg1: memref<8x128xf32, #tpu.memory_space<vmem>>, %arg2: memref<8x128xf32, #tpu.memory_space<vmem>>, %arg3: memref<1x128xf32, #tpu.memory_space<vmem>>, %arg4: memref<1x128xf32, #tpu.memory_space<vmem>>, %arg5: memref<8x128xf32, #tpu.memory_space<vmem>>) attributes {dimension_semantics = [#tpu.dimension_semantics<parallel>], iteration_bounds = array<i64: 1>, scalar_prefetch = 0 : i64, scratch_operands = 0 : i64, tpu.core_type = #tpu.core_type<tc>, window_params = [{transform_indices = @transform_0, window_bounds = array<i64: 8, 128>}, {transform_indices = @transform_1, window_bounds = array<i64: 8, 128>}, {pipeline_mode = #tpu.pipeline_mode<synchronous>, transform_indices = @transform_2, window_bounds = array<i64: 1, 128>}, {pipeline_mode = #tpu.pipeline_mode<synchronous>, transform_indices = @transform_3, window_bounds = array<i64: 1, 128>}, {transform_indices = @transform_4, window_bounds = array<i64: 8, 128>}]} {
    %c0 = arith.constant 0 : index
    %c0_0 = arith.constant 0 : index
    %0 = vector.load %arg1[%c0, %c0_0] : memref<8x128xf32, #tpu.memory_space<vmem>>, vector<8x128xf32>
    %c0_1 = arith.constant 0 : index
    %c0_2 = arith.constant 0 : index
    %1 = vector.load %arg3[%c0_1, %c0_2] : memref<1x128xf32, #tpu.memory_space<vmem>>, vector<1x128xf32>
    %2 = vector.broadcast %1 : vector<1x128xf32> to vector<8x128xf32>
    %3 = arith.mulf %0, %2 : vector<8x128xf32>
    %c0_3 = arith.constant 0 : index
    %c0_4 = arith.constant 0 : index
    %4 = vector.load %arg4[%c0_3, %c0_4] : memref<1x128xf32, #tpu.memory_space<vmem>>, vector<1x128xf32>
    %5 = vector.broadcast %4 : vector<1x128xf32> to vector<8x128xf32>
    %6 = arith.addf %3, %5 : vector<8x128xf32>
    %c0_5 = arith.constant 0 : index
    %c0_6 = arith.constant 0 : index
    %7 = vector.load %arg2[%c0_5, %c0_6] : memref<8x128xf32, #tpu.memory_space<vmem>>, vector<8x128xf32>
    %8 = arith.addf %6, %7 : vector<8x128xf32>
    %cst = arith.constant 0.000000e+00 : f32
    %9 = vector.broadcast %cst : f32 to vector<8x128xf32>
    %10 = arith.cmpf oge, %8, %9 : vector<8x128xf32>
    %cst_7 = arith.constant 0.00999999977 : f32
    %11 = vector.broadcast %cst_7 : f32 to vector<8x128xf32>
    %12 = arith.mulf %11, %8 : vector<8x128xf32>
    %13 = arith.select %10, %8, %12 : vector<8x128xi1>, vector<8x128xf32>
    %c0_8 = arith.constant 0 : index
    %c0_9 = arith.constant 0 : index
    %14 = vector.load %arg5[%c0_8, %c0_9] : memref<8x128xf32, #tpu.memory_space<vmem>>, vector<8x128xf32>
    tpu.vector_store %arg5[%c0_8, %c0_9], %13 {strides = array<i32>} : memref<8x128xf32, #tpu.memory_space<vmem>>, vector<8x128xf32>,
    return
  }
  func.func @transform_0(%arg0: i32) -> (i32, i32) {
    %c0_i32 = arith.constant 0 : i32
    %c0_i32_0 = arith.constant 0 : i32
    return %arg0, %c0_i32 : i32, i32
  }
  func.func @transform_1(%arg0: i32) -> (i32, i32) {
    %c0_i32 = arith.constant 0 : i32
    %c0_i32_0 = arith.constant 0 : i32
    return %arg0, %c0_i32 : i32, i32
  }
  func.func @transform_2(%arg0: i32) -> (i32, i32) {
    %c0_i32 = arith.constant 0 : i32
    %c0_i32_0 = arith.constant 0 : i32
    %c0_i32_1 = arith.constant 0 : i32
    return %c0_i32, %c0_i32_0 : i32, i32
  }
  func.func @transform_3(%arg0: i32) -> (i32, i32) {
    %c0_i32 = arith.constant 0 : i32
    %c0_i32_0 = arith.constant 0 : i32
    %c0_i32_1 = arith.constant 0 : i32
    return %c0_i32, %c0_i32_0 : i32, i32
  }
  func.func @transform_4(%arg0: i32) -> (i32, i32) {
    %c0_i32 = arith.constant 0 : i32
    %c0_i32_0 = arith.constant 0 : i32
    return %arg0, %c0_i32 : i32, i32
  }
}

</mosaic_0001>

<bundles_post_ra>
// kernel: tile.38
= control target key start
LH: loop header
LB: loop body
LE: loop exit
PB: predicated region body
PF: predicated region fallthrough
CT: control target
= control target key end

     0   :  { %s28_s0 = inlined_call_operand.vmem [shape: f32[8], index: 0, kind: input, shape index: {}]   ;;  %s29_s1 = inlined_call_operand.vmem [shape: f32[16,8], index: 1, kind: output, shape index: {}]  }
   0x1   :  { %v4_v0 = vld [vmem:[%s28_s0] ss:$0 sm:$0xff] }
   0x2   :  { %5 = vst [vmem:[%s29_s1] sm:$0xff] %v4_v0 }
   0x3   :  { %8 = vst [vmem:[%s29_s1 + $0x8] sm:$0xff] %v4_v0 }

// kernel: tile.39
= control target key start
LH: loop header
LB: loop body
LE: loop exit
PB: predicated region body
PF: predicated region fallthrough
CT: control target
= control target key end

     0   :  { %s131_s10 = smov 120   ;;  %s132_s11 = smov 104   ;;  %vm3_vm0 = vcmask 64512   ;;  %vm9_vm1 = vcmask 1048512   ;;  %vm15_vm2 = vcmask 982912   ;;  %vm21_vm3 = vcmask 917312   ;;  %s207_s0 = inlined_call_operand.vmem [shape: f32[16,8], index: 0, kind: input, shape index: {}]   ;;  %s208_s1 = inlined_call_operand.vmem [shape: f32[1,128], index: 1, kind: output, shape index: {}]  }
   0x1   :  { %v101_v0 = vld [vmem:[%s207_s0 + $0xf] sm:$0x1]   ;;  %v103_v1 = vld [vmem:[%s207_s0 + $0xd] sm:$0x1]   ;;  %v105_v2 = vld [vmem:[%s207_s0 + $0xb] sm:$0x1]  }
   0x2   :  { %7 = vrot.lane.b32.xlu0 %v101_v0, %s131_s10  ;;  %19 = vrot.lane.b32.xlu1 %v103_v1, %s132_s11  ;;  %s133_s14 = smov 88   ;;  %v102_v3 = vld [vmem:[%s207_s0 + $0xe] sm:$0x1]   ;;  %v104_v4 = vld [vmem:[%s207_s0 + $0xc] sm:$0x1]   ;;  %s134_s19 = smov 112  }
   0x3   :  { %31 = vrot.lane.b32.xlu2 %v105_v2, %s133_s14  ;;  %s135_s20 = smov 96   ;;  %v106_v5 = vld [vmem:[%s207_s0 + $0xa] sm:$0x1]   ;;  %s136_s23 = smov 80   ;;  %v107_v6 = vld [vmem:[%s207_s0 + $0x9] sm:$0x1]  }
   0x4   :  { %v108_v7 = vld [vmem:[%s207_s0 + $0x8] sm:$0x1]   ;;  %s137_s28 = smov 72   ;;  %s138_s29 = smov 64   ;;  %v109_v8 = vld [vmem:[%s207_s0 + $0x7] sm:$0x1]  }
   0x5   :  { %s139_s3 = smov 56   ;;  %v110_v9 = vld [vmem:[%s207_s0 + $0x6] sm:$0x1]   ;;  %v111_v10 = vld [vmem:[%s207_s0 + $0x5] sm:$0x1]   ;;  %s140_s8 = smov 48  }
   0x6   :  { %s141_s9 = smov 40   ;;  %v112_v11 = vld [vmem:[%s207_s0 + $0x4] sm:$0x1]   ;;  %s142_s12 = smov 32   ;;  %v113_v12 = vld [vmem:[%s207_s0 + $0x3] sm:$0x1]  }
   0x7   :  { %v114_v13 = vld [vmem:[%s207_s0 + $0x2] sm:$0x1]   ;;  %s143_s17 = smov 24   ;;  %s144_s18 = smov 16   ;;  %v115_v14 = vld [vmem:[%s207_s0 + $0x1] sm:$0x1]  }
   0x8   :  { %s145_s21 = smov 8   ;;  %v2_v15 = vld [vmem:[%s207_s0] sm:$0x1]   ;;  %vm27_vm4 = vcmask 851712   ;;  %vm33_vm5 = vcmask 786112   ;;  %vm39_vm6 = vcmask 720512  }
   0x9   :  { %4 = vst.msk [vmem:[#allocation0] sm:$0x1] %vm3_vm0, %v2_v15   ;;  %vm45_vm7 = vcmask 654912   ;;  %vm51_vm8 = vcmask 589312   ;;  %vm57_vm9 = vcmask 523712   ;;  %vm63_vm10 = vcmask 458112  }
   0xa   :  { %13 = vrot.lane.b32.xlu0 %v102_v3, %s134_s19  ;;  %25 = vrot.lane.b32.xlu1 %v104_v4, %s135_s20  ;;  %vm69_vm11 = vcmask 392512   ;;  %vm75_vm12 = vcmask 326912   ;;  %vm81_vm13 = vcmask 261312   ;;  %vm87_vm14 = vcmask 195712  }
   0xb   :  { %37 = vrot.lane.b32.xlu2 %v106_v5, %s136_s23  ;;  %vm93_vm15 = vcmask 130112  }
  0x12   :  { %43 = vrot.lane.b32.xlu0 %v107_v6, %s137_s28  ;;  %49 = vrot.lane.b32.xlu1 %v108_v7, %s138_s29 }
  0x13   :  { %55 = vrot.lane.b32.xlu2 %v109_v8, %s139_s3 }
  0x1a   :  { %61 = vrot.lane.b32.xlu0 %v110_v9, %s140_s8  ;;  %67 = vrot.lane.b32.xlu1 %v111_v10, %s141_s9 }
  0x1b   :  { %73 = vrot.lane.b32.xlu2 %v112_v11, %s142_s12 }
  0x22   :  { %79 = vrot.lane.b32.xlu0 %v113_v12, %s143_s17  ;;  %85 = vrot.lane.b32.xlu1 %v114_v13, %s144_s18 }
  0x23   :  { %91 = vrot.lane.b32.xlu2 %v115_v14, %s145_s21 }
  0x5d   :  { %v32_v16 = vpop.permute.xlu2 %31  }
  0x65   :  { %v38_v17 = vpop.permute.xlu2 %37  }
  0x6d   :  { %v56_v18 = vpop.permute.xlu2 %55  }
  0x74   :  { %v8_v19 = vpop.permute.xlu0 %7   ;;  %v20_v20 = vpop.permute.xlu1 %19  }
  0x75   :  { %10 = vst.msk [vmem:[#allocation0] sm:$0x1] %vm9_vm1, %v8_v19   ;;  %v74_v21 = vpop.permute.xlu2 %73  }
  0x7c   :  { %v14_v22 = vpop.permute.xlu0 %13   ;;  %v26_v23 = vpop.permute.xlu1 %25  }
  0x7d   :  { %16 = vst.msk [vmem:[#allocation0] sm:$0x1] %vm15_vm2, %v14_v22   ;;  %v92_v24 = vpop.permute.xlu2 %91  }
  0x7e   :  { %22 = vst.msk [vmem:[#allocation0] sm:$0x1] %vm21_vm3, %v20_v20  }
  0x7f   :  { %28 = vst.msk [vmem:[#allocation0] sm:$0x1] %vm27_vm4, %v26_v23  }
  0x80   :  { %34 = vst.msk [vmem:[#allocation0] sm:$0x1] %vm33_vm5, %v32_v16  }
  0x81   :  { %40 = vst.msk [vmem:[#allocation0] sm:$0x1] %vm39_vm6, %v38_v17  }
  0x84   :  { %v44_v25 = vpop.permute.xlu0 %43   ;;  %v50_v26 = vpop.permute.xlu1 %49  }
  0x85   :  { %46 = vst.msk [vmem:[#allocation0] sm:$0x1] %vm45_vm7, %v44_v25  }
  0x86   :  { %52 = vst.msk [vmem:[#allocation0] sm:$0x1] %vm51_vm8, %v50_v26  }
  0x87   :  { %58 = vst.msk [vmem:[#allocation0] sm:$0x1] %vm57_vm9, %v56_v18  }
  0x8c   :  { %v62_v27 = vpop.permute.xlu0 %61   ;;  %v68_v28 = vpop.permute.xlu1 %67  }
  0x8d   :  { %64 = vst.msk [vmem:[#allocation0] sm:$0x1] %vm63_vm10, %v62_v27  }
  0x8e   :  { %70 = vst.msk [vmem:[#allocation0] sm:$0x1] %vm69_vm11, %v68_v28  }
  0x8f   :  { %76 = vst.msk [vmem:[#allocation0] sm:$0x1] %vm75_vm12, %v74_v21  }
  0x94   :  { %v80_v29 = vpop.permute.xlu0 %79   ;;  %v86_v30 = vpop.permute.xlu1 %85  }
  0x95   :  { %82 = vst.msk [vmem:[#allocation0] sm:$0x1] %vm81_vm13, %v80_v29  }
  0x96   :  { %88 = vst.msk [vmem:[#allocation0] sm:$0x1] %vm87_vm14, %v86_v30  }
  0x97   :  { %94 = vst.msk [vmem:[#allocation0] sm:$0x1] %vm93_vm15, %v92_v24  }
  0x9e   :  { %v97_v31 = vld [vmem:[#allocation0] sm:$0x1] }
  0x9f   :  { %100 = vst [vmem:[%s208_s1] sm:$0x1] %v97_v31 }

// kernel: improved_conv_block.3
= control target key start
LH: loop header
LB: loop body
LE: loop exit
PB: predicated region body
PF: predicated region fallthrough
CT: control target
= control target key end

     0   :  { %vm191_vm0 = vcmask 130048   ;;  %vm208_vm1 = vcmask 64512   ;;  %vm246_vm2 = vcmask 57344   ;;  %s623_s1 = inlined_call_operand.vmem [shape: bf16[128,16], index: 1, kind: input, shape index: {}]   ;;  %s624_s0 = inlined_call_operand.vmem [shape: bf16[128,128], index: 0, kind: input, shape index: {}]   ;;  %s625_s2 = inlined_call_operand.vmem [shape: f32[128,16], index: 2, kind: output, shape index: {0}]   ;;  %s626_s3 = inlined_call_operand.vmem [shape: f32[1,1,8], index: 3, kind: output, shape index: {1}]   ;;  %s627_s4 = inlined_call_operand.vmem [shape: f32[1,1,8], index: 4, kind: output, shape index: {2}]  }
   0x1   :  { %v393_v0 = vld [vmem:[%s623_s1 + $0x38] sm:$0xff]  ;;  %v392_v1 = vld [vmem:[%s623_s1 + $0x30] sm:$0xff]  ;;  %v391_v2 = vld [vmem:[%s623_s1 + $0x28] sm:$0xff] }
   0x2   :  { %142 = vmatpush.bf16.msra.mxu0 %v393_v0  ;;  %394 = vmatpush.bf16.msra.mxu1 %v393_v0  ;;  %v390_v3 = vld [vmem:[%s623_s1 + $0x20] sm:$0xff]  ;;  %v389_v4 = vld [vmem:[%s623_s1 + $0x18] sm:$0xff]  ;;  %v388_v5 = vld [vmem:[%s623_s1 + $0x10] sm:$0xff] }
   0x3   :  { %395 = vmatpush.bf16.msra.mxu2 %v393_v0  ;;  %396 = vmatpush.bf16.msra.mxu3 %v393_v0  ;;  %v387_v6 = vld [vmem:[%s623_s1 + $0x8] sm:$0xff]  ;;  %v386_v7 = vld [vmem:[%s623_s1] sm:$0xff]  ;;  %v380_v9 = vld [vmem:[%s624_s0 + $0x10] sm:$0xff] }
   0x4   :  { %v378_v8 = vld [vmem:[%s624_s0] sm:$0xff]  ;;  %v384_v11 = vld [vmem:[%s624_s0 + $0x30] sm:$0xff]  ;;  %v379_v12 = vld [vmem:[%s624_s0 + $0x8] sm:$0xff] }
   0x5   :  { %v382_v10 = vld [vmem:[%s624_s0 + $0x20] sm:$0xff]  ;;  %v381_v13 = vld [vmem:[%s624_s0 + $0x18] sm:$0xff]  ;;  %v383_v14 = vld [vmem:[%s624_s0 + $0x28] sm:$0xff] }
   0x6   :  { %143 = vmatpush.bf16.msra.mxu0 %v392_v1  ;;  %397 = vmatpush.bf16.msra.mxu1 %v392_v1  ;;  %v385_v15 = vld [vmem:[%s624_s0 + $0x38] sm:$0xff] }
   0x7   :  { %398 = vmatpush.bf16.msra.mxu2 %v392_v1  ;;  %399 = vmatpush.bf16.msra.mxu3 %v392_v1 }
   0xa   :  { %144 = vmatpush.bf16.msra.mxu0 %v391_v2  ;;  %400 = vmatpush.bf16.msra.mxu1 %v391_v2 }
   0xb   :  { %401 = vmatpush.bf16.msra.mxu2 %v391_v2  ;;  %402 = vmatpush.bf16.msra.mxu3 %v391_v2 }
   0xe   :  { %145 = vmatpush.bf16.msra.mxu0 %v390_v3  ;;  %403 = vmatpush.bf16.msra.mxu1 %v390_v3 }
   0xf   :  { %404 = vmatpush.bf16.msra.mxu2 %v390_v3  ;;  %405 = vmatpush.bf16.msra.mxu3 %v390_v3 }
  0x12   :  { %146 = vmatpush.bf16.msra.mxu0 %v389_v4  ;;  %406 = vmatpush.bf16.msra.mxu1 %v389_v4 }
  0x13   :  { %407 = vmatpush.bf16.msra.mxu2 %v389_v4  ;;  %408 = vmatpush.bf16.msra.mxu3 %v389_v4 }
  0x16   :  { %147 = vmatpush.bf16.msra.mxu0 %v388_v5  ;;  %409 = vmatpush.bf16.msra.mxu1 %v388_v5 }
  0x17   :  { %410 = vmatpush.bf16.msra.mxu2 %v388_v5  ;;  %411 = vmatpush.bf16.msra.mxu3 %v388_v5 }
  0x1a   :  { %148 = vmatpush.bf16.msra.mxu0 %v387_v6  ;;  %412 = vmatpush.bf16.msra.mxu1 %v387_v6 }
  0x1b   :  { %413 = vmatpush.bf16.msra.mxu2 %v387_v6  ;;  %414 = vmatpush.bf16.msra.mxu3 %v387_v6 }
  0x1e   :  { %149 = vmatpush.bf16.msra.mxu0 %v386_v7  ;;  %415 = vmatpush.bf16.msra.mxu1 %v386_v7 }
  0x1f   :  { %416 = vmatpush.bf16.msra.mxu2 %v386_v7  ;;  %417 = vmatpush.bf16.msra.mxu3 %v386_v7 }
  0x21   :  { %150 = vmatmul.bf16.vlgmr.msra.gmra.mxu0 %v378_v8  ;;  %160 = vmatmul.bf16.vlgmr.msra.gmra.mxu1 %v380_v9 }
  0x22   :  { %170 = vmatmul.bf16.vlgmr.msra.gmra.mxu2 %v382_v10  ;;  %180 = vmatmul.bf16.vlgmr.msra.gmra.mxu3 %v384_v11 }
  0x31   :  { %155 = vmatmul.bf16.gmra.mxu0 %v379_v12  ;;  %165 = vmatmul.bf16.gmra.mxu1 %v381_v13 }
  0x32   :  { %175 = vmatmul.bf16.gmra.mxu2 %v383_v14  ;;  %185 = vmatmul.bf16.gmra.mxu3 %v385_v15 }
  0x9e   :  { %v151_v16 = vpop.f32.mrf.mxu0  ;;  %v161_v17 = vpop.f32.mrf.mxu1 }
  0x9f   :  { %192 = vst.msk [vmem:[%s625_s2] sm:$0xff] %vm191_vm0, %v151_v16  ;;  %v248_v27 = vmul.f32 %v151_v16, %v151_v16  ;;  %v209_v30 = vsel %vm208_vm1, %v151_v16, 0.0  ;;  %v252_v42 = vmul.f32 %v161_v17, %v161_v17  ;;  %v216_v47 = vsel %vm208_vm1, %v161_v17, 0.0 }
  0xa0   :  { %196 = vst.msk [vmem:[%s625_s2 + $0x20] sm:$0xff] %vm191_vm0, %v161_v17 }
  0xa1   :  { %v264_v34 = vsel %vm208_vm1, %v248_v27, 0.0  ;;  %v271_v52 = vsel %vm208_vm1, %v252_v42, 0.0 }
  0xa5   :  { %v499_v18 = vpop.f32.mrf.mxu2  ;;  %v501_v19 = vpop.f32.mrf.mxu3 }
  0xa6   :  { %v153_v20 = vpop.f32.mrf.mxu0  ;;  %v163_v21 = vpop.f32.mrf.mxu1  ;;  %200 = vst.msk [vmem:[%s625_s2 + $0x40] sm:$0xff] %vm191_vm0, %v499_v18  ;;  %v256_v0 = vmul.f32 %v499_v18, %v499_v18  ;;  %v224_v5 = vsel %vm208_vm1, %v499_v18, 0.0 }
  0xa7   :  { %193 = vst.msk [vmem:[%s625_s2 + $0x8] sm:$0xff] %vm191_vm0, %v153_v20  ;;  %v249_v26 = vmul.f32 %v153_v20, %v153_v20  ;;  %v210_v28 = vsel %vm208_vm1, %v153_v20, 0.0  ;;  %v253_v48 = vmul.f32 %v163_v21, %v163_v21  ;;  %v218_v53 = vsel %vm208_vm1, %v163_v21, 0.0 }
  0xa8   :  { %197 = vst.msk [vmem:[%s625_s2 + $0x28] sm:$0xff] %vm191_vm0, %v163_v21  ;;  %v211_v33 = vadd.f32 %v210_v28, %v209_v30  ;;  %v279_v10 = vsel %vm208_vm1, %v256_v0, 0.0  ;;  %v260_v21 = vmul.f32 %v501_v19, %v501_v19 }
  0xa9   :  { %204 = vst.msk [vmem:[%s625_s2 + $0x60] sm:$0xff] %vm191_vm0, %v501_v19  ;;  %v265_v31 = vsel %vm208_vm1, %v249_v26, 0.0  ;;  %v273_v57 = vsel %vm208_vm1, %v253_v48, 0.0 }
  0xaa   :  { %v266_v38 = vadd.f32 %v265_v31, %v264_v34 }
  0xad   :  { %v521_v22 = vpop.f32.mrf.mxu2  ;;  %v523_v23 = vpop.f32.mrf.mxu3 }
  0xae   :  { %v156_v24 = vpop.f32.mrf.mxu0  ;;  %v166_v25 = vpop.f32.mrf.mxu1  ;;  %201 = vst.msk [vmem:[%s625_s2 + $0x48] sm:$0xff] %vm191_vm0, %v521_v22  ;;  %v257_v6 = vmul.f32 %v521_v22, %v521_v22  ;;  %v226_v11 = vsel %vm208_vm1, %v521_v22, 0.0  ;;  %v232_v22 = vsel %vm208_vm1, %v501_v19, 0.0  ;;  %v261_v28 = vmul.f32 %v523_v23, %v523_v23 }
  0xaf   :  { %194 = vst.msk [vmem:[%s625_s2 + $0x10] sm:$0xff] %vm191_vm0, %v156_v24  ;;  %v250_v29 = vmul.f32 %v156_v24, %v156_v24  ;;  %v212_v32 = vsel %vm208_vm1, %v156_v24, 0.0  ;;  %v254_v54 = vmul.f32 %v166_v25, %v166_v25  ;;  %v220_v58 = vsel %vm208_vm1, %v166_v25, 0.0 }
  0xb0   :  { %198 = vst.msk [vmem:[%s625_s2 + $0x30] sm:$0xff] %vm191_vm0, %v166_v25  ;;  %v213_v39 = vadd.f32 %v212_v32, %v211_v33  ;;  %v281_v15 = vsel %vm208_vm1, %v257_v6, 0.0  ;;  %v287_v32 = vsel %vm208_vm1, %v260_v21, 0.0  ;;  %v234_v33 = vsel %vm208_vm1, %v523_v23, 0.0 }
  0xb1   :  { %205 = vst.msk [vmem:[%s625_s2 + $0x68] sm:$0xff] %vm191_vm0, %v523_v23  ;;  %v267_v35 = vsel %vm208_vm1, %v250_v29, 0.0  ;;  %v275_v1 = vsel %vm208_vm1, %v254_v54, 0.0 }
  0xb2   :  { %v268_v45 = vadd.f32 %v267_v35, %v266_v38  ;;  %v289_v38 = vsel %vm208_vm1, %v261_v28, 0.0 }
  0xb5   :  { %v176_v36 = vpop.f32.mrf.mxu2  ;;  %v549_v37 = vpop.f32.mrf.mxu3 }
  0xb6   :  { %v158_v40 = vpop.f32.mrf.mxu0  ;;  %v168_v41 = vpop.f32.mrf.mxu1  ;;  %202 = vst.msk [vmem:[%s625_s2 + $0x50] sm:$0xff] %vm191_vm0, %v176_v36  ;;  %v258_v12 = vmul.f32 %v176_v36, %v176_v36  ;;  %v228_v16 = vsel %vm208_vm1, %v176_v36, 0.0  ;;  %v262_v34 = vmul.f32 %v549_v37, %v549_v37  ;;  %v236_v19 = vsel %vm208_vm1, %v549_v37, 0.0 }
  0xb7   :  { %195 = vst.msk [vmem:[%s625_s2 + $0x18] sm:$0xff] %vm191_vm0, %v158_v40  ;;  %v214_v43 = vsel %vm208_vm1, %v158_v40, 0.0  ;;  %v251_v44 = vmul.f32 %v158_v40, %v158_v40  ;;  %v255_v59 = vmul.f32 %v168_v41, %v168_v41  ;;  %v222_v2 = vsel %vm208_vm1, %v168_v41, 0.0 }
  0xb8   :  { %v215_v46 = vadd.f32 %v214_v43, %v213_v39  ;;  %199 = vst.msk [vmem:[%s625_s2 + $0x38] sm:$0xff] %vm191_vm0, %v168_v41  ;;  %v283_v24 = vsel %vm208_vm1, %v258_v12, 0.0  ;;  %v291_v42 = vsel %vm208_vm1, %v262_v34, 0.0 }
  0xb9   :  { %v269_v49 = vsel %vm208_vm1, %v251_v44, 0.0  ;;  %206 = vst.msk [vmem:[%s625_s2 + $0x70] sm:$0xff] %vm191_vm0, %v549_v37  ;;  %v277_v7 = vsel %vm208_vm1, %v255_v59, 0.0 }
  0xba   :  { %v217_v50 = vadd.f32 %v216_v47, %v215_v46  ;;  %v270_v51 = vadd.f32 %v269_v49, %v268_v45 }
  0xbc   :  { %v272_v55 = vadd.f32 %v271_v52, %v270_v51  ;;  %v219_v56 = vadd.f32 %v218_v53, %v217_v50 }
  0xbd   :  { %v178_v60 = vpop.f32.mrf.mxu2  ;;  %v188_v61 = vpop.f32.mrf.mxu3 }
  0xbe   :  { %v221_v62 = vadd.f32 %v220_v58, %v219_v56  ;;  %v274_v63 = vadd.f32 %v273_v57, %v272_v55  ;;  %203 = vst.msk [vmem:[%s625_s2 + $0x58] sm:$0xff] %vm191_vm0, %v178_v60  ;;  %v259_v17 = vmul.f32 %v178_v60, %v178_v60  ;;  %v230_v25 = vsel %vm208_vm1, %v178_v60, 0.0 }
  0xbf   :  { %207 = vst.msk [vmem:[%s625_s2 + $0x78] sm:$0xff] %vm191_vm0, %v188_v61  ;;  %v263_v39 = vmul.f32 %v188_v61, %v188_v61  ;;  %v238_v43 = vsel %vm208_vm1, %v188_v61, 0.0 }
  0xc0   :  { %v223_v3 = vadd.f32 %v222_v2, %v221_v62  ;;  %v276_v4 = vadd.f32 %v275_v1, %v274_v63  ;;  %v285_v29 = vsel %vm208_vm1, %v259_v17, 0.0 }
  0xc1   :  { %v293_v23 = vsel %vm208_vm1, %v263_v39, 0.0 }
  0xc2   :  { %v225_v8 = vadd.f32 %v224_v5, %v223_v3  ;;  %v278_v9 = vadd.f32 %v277_v7, %v276_v4 }
  0xc4   :  { %v280_v13 = vadd.f32 %v279_v10, %v278_v9  ;;  %v227_v14 = vadd.f32 %v226_v11, %v225_v8 }
  0xc6   :  { %v229_v18 = vadd.f32 %v228_v16, %v227_v14  ;;  %v282_v20 = vadd.f32 %v281_v15, %v280_v13 }
  0xc8   :  { %v284_v26 = vadd.f32 %v283_v24, %v282_v20  ;;  %v231_v27 = vadd.f32 %v230_v25, %v229_v18 }
  0xca   :  { %v233_v30 = vadd.f32 %v232_v22, %v231_v27  ;;  %v286_v31 = vadd.f32 %v285_v29, %v284_v26 }
  0xcc   :  { %v288_v35 = vadd.f32 %v287_v32, %v286_v31  ;;  %v235_v36 = vadd.f32 %v234_v33, %v233_v30 }
  0xce   :  { %v237_v40 = vadd.f32 %v236_v19, %v235_v36  ;;  %v290_v41 = vadd.f32 %v289_v38, %v288_v35 }
  0xd0   :  { %v292_v44 = vadd.f32 %v291_v42, %v290_v41  ;;  %v239_v45 = vadd.f32 %v238_v43, %v237_v40 }
  0xd2   :  { %v240_v46 = vrot.slane %v239_v45, 4  ;;  %v294_v47 = vadd.f32 %v293_v23, %v292_v44 }
  0xd4   :  { %v241_v48 = vadd.f32 %v240_v46, %v239_v45  ;;  %v295_v49 = vrot.slane %v294_v47, 4 }
  0xd6   :  { %v242_v50 = vrot.slane %v241_v48, 2  ;;  %v296_v51 = vadd.f32 %v295_v49, %v294_v47 }
  0xd8   :  { %v243_v52 = vadd.f32 %v242_v50, %v241_v48  ;;  %v297_v53 = vrot.slane %v296_v51, 2 }
  0xda   :  { %v244_v37 = vrot.slane %v243_v52, 1  ;;  %v298_v54 = vadd.f32 %v297_v53, %v296_v51 }
  0xdc   :  { %v245_v55 = vadd.f32 %v244_v37, %v243_v52  ;;  %v299_v56 = vrot.slane %v298_v54, 1 }
  0xde   :  { %247 = vst.msk [vmem:[%s626_s3] sm:$0x1] %vm246_vm2, %v245_v55  ;;  %v300_v57 = vadd.f32 %v299_v56, %v298_v54 }
  0xe0   :  { %301 = vst.msk [vmem:[%s627_s4] sm:$0x1] %vm246_vm2, %v300_v57 }

// kernel: improved_conv_block.5
= control target key start
LH: loop header
LB: loop body
LE: loop exit
PB: predicated region body
PF: predicated region fallthrough
CT: control target
= control target key end

     0   :  { %s80_s0 = inlined_call_operand.vmem [shape: f32[8,128], index: 0, kind: input, shape index: {}]   ;;  %s81_s2 = inlined_call_operand.vmem [shape: f32[1,128], index: 2, kind: input, shape index: {}]   ;;  %s82_s3 = inlined_call_operand.vmem [shape: f32[1,128], index: 3, kind: input, shape index: {}]   ;;  %s83_s1 = inlined_call_operand.vmem [shape: f32[8,128], index: 1, kind: input, shape index: {}]   ;;  %s84_s4 = inlined_call_operand.vmem [shape: f32[8,128], index: 4, kind: output, shape index: {}]  }
   0x1   :  { %v17_v0 = vld [vmem:[%s80_s0] sm:$0xff] }
   0x2   :  { %v38_v1 = vld [vmem:[%s81_s2] ss:$0 sm:$0xff] }
   0x3   :  { %v39_v2 = vld [vmem:[%s82_s3] ss:$0 sm:$0xff]  ;;  %v22_v3 = vmul.f32 %v38_v1, %v17_v0 }
   0x4   :  { %v28_v4 = vld [vmem:[%s83_s1] sm:$0xff] }
   0x5   :  { %v27_v5 = vadd.f32 %v39_v2, %v22_v3 }
   0x7   :  { %v29_v6 = vadd.f32 %v28_v4, %v27_v5 }
   0x9   :  { %vm30_vm0 = vcmp.ge.f32.partialorder %v29_v6, 0.0  ;;  %v31_v7 = vmul.f32 0.01, %v29_v6 }
   0xb   :  { %v32_v8 = vsel %vm30_vm0, %v29_v6, %v31_v7 }
   0xc   :  { %33 = vst [vmem:[%s84_s4] sm:$0xff] %v32_v8 }

// kernel: improved_conv_block.4
= control target key start
LH: loop header
LB: loop body
LE: loop exit
PB: predicated region body
PF: predicated region fallthrough
CT: control target
= control target key end

     0   :  { %v819_v0 = vmov 0   ;;  %v146_v37 = vlaneseq  ;;  %s1344_s2 = inlined_call_operand.vmem [shape: s32[128,1], index: 2, kind: input, shape index: {}]   ;;  %s1345_s1 = inlined_call_operand.vmem [shape: s32[128,1], index: 1, kind: input, shape index: {}]   ;;  %s1346_s3 = inlined_call_operand.vmem [shape: f32[1,128], index: 3, kind: input, shape index: {}]   ;;  %s1347_s4 = inlined_call_operand.vmem [shape: f32[1,128], index: 4, kind: input, shape index: {}]   ;;  %s1348_s5 = inlined_call_operand.vmem [shape: bf16[128,8], index: 5, kind: input, shape index: {}]   ;;  %s1349_s0 = inlined_call_operand.vmem [shape: bf16[128,128], index: 0, kind: input, shape index: {}]   ;;  %s1350_s6 = inlined_call_operand.vmem [shape: f32[128,8], index: 6, kind: output, shape index: {0}]   ;;  %s1351_s7 = inlined_call_operand.vmem [shape: f32[1,1,8], index: 7, kind: output, shape index: {1}]   ;;  %s1352_s8 = inlined_call_operand.vmem [shape: f32[1,1,8], index: 8, kind: output, shape index: {2}]  }
   0x1   :  { %816 = vset.pattern.permute.xlu2 %v819_v0  ;;  %815 = vset.pattern.permute.xlu1 %v819_v0  ;;  %v176_v1 = vld [vmem:[%s1344_s2] sm:$0xff]  ;;  %v177_v4 = vld [vmem:[%s1344_s2 + $0x8] sm:$0xff]  ;;  %v163_v13 = vld [vmem:[%s1345_s1 + $0x18] sm:$0xff] }
   0x2   :  { %v164_v2 = vld [vmem:[%s1345_s1 + $0x20] sm:$0xff]  ;;  %814 = vset.pattern.permute.xlu0 %v819_v0  ;;  %324 = vperm.xlu1 %815, %v176_v1   ;;  %v165_v5 = vld [vmem:[%s1345_s1 + $0x28] sm:$0xff]  ;;  %v162_v15 = vld [vmem:[%s1345_s1 + $0x10] sm:$0xff]  ;;  %v979_v39 = vand.u32 127, %v146_v37 }
   0x3   :  { %v160_v3 = vld [vmem:[%s1345_s1] sm:$0xff]  ;;  %206 = vperm.xlu2 %816, %v164_v2   ;;  %v161_v6 = vld [vmem:[%s1345_s1 + $0x8] sm:$0xff]  ;;  %v178_v16 = vld [vmem:[%s1344_s2 + $0x10] sm:$0xff] }
   0x4   :  { %194 = vperm.xlu0 %814, %v160_v3   ;;  %v169_v7 = vld [vmem:[%s1345_s1 + $0x48] sm:$0xff]  ;;  %v180_v8 = vld [vmem:[%s1344_s2 + $0x20] sm:$0xff]  ;;  %v179_v17 = vld [vmem:[%s1344_s2 + $0x18] sm:$0xff]  ;;  %vm148_vm0 = vcmp.ge.s32.totalorder %v979_v39, 24  ;;  %vm150_vm1 = vcmp.ge.s32.totalorder %v979_v39, 48  ;;  %vm1353_vm4 = vcmp.lt.s32.totalorder %v979_v39, 72 }
   0x5   :  { %v168_v9 = vld [vmem:[%s1345_s1 + $0x40] sm:$0xff]  ;;  %v185_v11 = vld [vmem:[%s1344_s2 + $0x48] sm:$0xff]  ;;  %v166_v20 = vld [vmem:[%s1345_s1 + $0x30] sm:$0xff]  ;;  %v149_v42 = vsel %vm148_vm0, 1, %v819_v0  ;;  %v151_v43 = vsel %vm150_vm1, 1, %v819_v0 }
   0x6   :  { %v184_v10 = vld [vmem:[%s1344_s2 + $0x40] sm:$0xff]  ;;  %v181_v12 = vld [vmem:[%s1344_s2 + $0x28] sm:$0xff]  ;;  %v170_v22 = vld [vmem:[%s1345_s1 + $0x50] sm:$0xff]  ;;  %v991_v45 = vadd.s32 %v151_v43, %v149_v42 }
   0x7   :  { %v172_v14 = vld [vmem:[%s1345_s1 + $0x60] sm:$0xff]  ;;  %v173_v18 = vld [vmem:[%s1345_s1 + $0x68] sm:$0xff]  ;;  %v171_v23 = vld [vmem:[%s1345_s1 + $0x58] sm:$0xff] }
   0x8   :  { %v189_v19 = vld [vmem:[%s1344_s2 + $0x68] sm:$0xff]  ;;  %v188_v21 = vld [vmem:[%s1344_s2 + $0x60] sm:$0xff]  ;;  %v167_v24 = vld [vmem:[%s1345_s1 + $0x38] sm:$0xff]  ;;  %v153_v48 = vmul.u32 24, %v991_v45 }
   0x9   :  { %v183_v25 = vld [vmem:[%s1344_s2 + $0x38] sm:$0xff]  ;;  %v186_v26 = vld [vmem:[%s1344_s2 + $0x50] sm:$0xff]  ;;  %v747_v34 = vld [vmem:[%s1348_s5 + $0x28] sm:$0xff] }
   0xa   :  { %327 = vperm.xlu1 %815, %v177_v4   ;;  %v182_v27 = vld [vmem:[%s1344_s2 + $0x30] sm:$0xff]  ;;  %v749_v29 = vld [vmem:[%s1348_s5 + $0x38] sm:$0xff]  ;;  %v746_v36 = vld [vmem:[%s1348_s5 + $0x20] sm:$0xff]  ;;  %v154_v49 = vsub.s32 %v979_v39, %v153_v48 }
   0xb   :  { %209 = vperm.xlu2 %816, %v165_v5   ;;  %v174_v28 = vld [vmem:[%s1345_s1 + $0x70] sm:$0xff]  ;;  %v175_v30 = vld [vmem:[%s1345_s1 + $0x78] sm:$0xff]  ;;  %539 = vmatpush.bf16.msra.mxu0 %v749_v29  ;;  %v743_v44 = vld [vmem:[%s1348_s5 + $0x8] sm:$0xff] }
   0xc   :  { %197 = vperm.xlu0 %814, %v161_v6   ;;  %v187_v31 = vld [vmem:[%s1344_s2 + $0x58] sm:$0xff]  ;;  %789 = vmatpush.bf16.msra.mxu1 %v749_v29  ;;  %v748_v32 = vld [vmem:[%s1348_s5 + $0x30] sm:$0xff]  ;;  %v742_v46 = vld [vmem:[%s1348_s5] sm:$0xff]  ;;  %vm155_vm2 = vcmp.ge.s32.totalorder %v154_v49, 8  ;;  %vm157_vm3 = vcmp.ge.s32.totalorder %v154_v49, 16 }
   0xd   :  { %790 = vmatpush.bf16.msra.mxu2 %v749_v29  ;;  %791 = vmatpush.bf16.msra.mxu3 %v749_v29  ;;  %v191_v33 = vld [vmem:[%s1344_s2 + $0x78] sm:$0xff]  ;;  %v190_v35 = vld [vmem:[%s1344_s2 + $0x70] sm:$0xff]  ;;  %v751_v51 = vld [vmem:[%s1349_s0] sm:$0xff]   ;;  %v156_v52 = vsel %vm155_vm2, 1, %v819_v0  ;;  %v158_v53 = vsel %vm157_vm3, 1, %v819_v0 }
   0xe   :  { %v745_v38 = vld [vmem:[%s1348_s5 + $0x18] sm:$0xff]  ;;  %v744_v40 = vld [vmem:[%s1348_s5 + $0x10] sm:$0xff]  ;;  %v753_v55 = vunpack.c.h.bf16 %v751_v51  ;;  %v752_v57 = vunpack.c.l.bf16 %v751_v51  ;;  %v1006_v58 = vld [vmem:[%s1346_s3] ss:$0 sm:$0xff]  ;;  %v1008_v59 = vadd.s32 %v158_v53, %v156_v52 }
   0xf   :  { %540 = vmatpush.bf16.msra.mxu0 %v748_v32  ;;  %v1019_v63 = vld [vmem:[%s1347_s4] ss:$0 sm:$0xff]  ;;  %v783_v5 = vld [vmem:[%s1349_s0 + $0x10] sm:$0xff]   ;;  %v782_v53 = vld [vmem:[%s1349_s0 + $0x8] sm:$0xff]  }
  0x10   :  { %792 = vmatpush.bf16.msra.mxu1 %v748_v32  ;;  %v63_v61 = vmul.f32 %v1006_v58, %v753_v55  ;;  %v62_v62 = vmul.f32 %v1006_v58, %v752_v57 }
  0x11   :  { %793 = vmatpush.bf16.msra.mxu2 %v748_v32  ;;  %794 = vmatpush.bf16.msra.mxu3 %v748_v32 }
  0x12   :  { %221 = vperm.xlu1 %815, %v169_v7   ;;  %v83_v4 = vadd.f32 %v1019_v63, %v63_v61  ;;  %v82_v7 = vadd.f32 %v1019_v63, %v62_v62  ;;  %v756_v61 = vunpack.c.l.bf16 %v782_v53  ;;  %v757_v62 = vunpack.c.h.bf16 %v782_v53 }
  0x13   :  { %336 = vperm.xlu2 %816, %v180_v8   ;;  %541 = vmatpush.bf16.msra.mxu0 %v747_v34 }
  0x14   :  { %218 = vperm.xlu0 %814, %v168_v9   ;;  %795 = vmatpush.bf16.msra.mxu1 %v747_v34  ;;  %v760_v9 = vunpack.c.l.bf16 %v783_v5  ;;  %vm99_vm0 = vcmp.ge.f32.partialorder %v83_v4, 0.0  ;;  %vm98_vm1 = vcmp.ge.f32.partialorder %v82_v7, 0.0 }
  0x15   :  { %796 = vmatpush.bf16.msra.mxu2 %v747_v34  ;;  %797 = vmatpush.bf16.msra.mxu3 %v747_v34 }
  0x17   :  { %542 = vmatpush.bf16.msra.mxu0 %v746_v36 }
  0x18   :  { %798 = vmatpush.bf16.msra.mxu1 %v746_v36 }
  0x19   :  { %799 = vmatpush.bf16.msra.mxu2 %v746_v36  ;;  %800 = vmatpush.bf16.msra.mxu3 %v746_v36 }
  0x1a   :  { %348 = vperm.xlu1 %815, %v184_v10  }
  0x1b   :  { %351 = vperm.xlu2 %816, %v185_v11   ;;  %543 = vmatpush.bf16.msra.mxu0 %v745_v38 }
  0x1c   :  { %339 = vperm.xlu0 %814, %v181_v12   ;;  %801 = vmatpush.bf16.msra.mxu1 %v745_v38  ;;  %v115_v12 = vmul.f32 0.01, %v83_v4 }
  0x1d   :  { %802 = vmatpush.bf16.msra.mxu2 %v745_v38  ;;  %803 = vmatpush.bf16.msra.mxu3 %v745_v38 }
  0x1f   :  { %544 = vmatpush.bf16.msra.mxu0 %v744_v40 }
  0x20   :  { %804 = vmatpush.bf16.msra.mxu1 %v744_v40 }
  0x21   :  { %805 = vmatpush.bf16.msra.mxu2 %v744_v40  ;;  %806 = vmatpush.bf16.msra.mxu3 %v744_v40  ;;  %v784_v40 = vld [vmem:[%s1349_s0 + $0x18] sm:$0xff]  }
  0x22   :  { %203 = vperm.xlu1 %815, %v163_v13   ;;  %v785_v13 = vld [vmem:[%s1349_s0 + $0x20] sm:$0xff]  }
  0x23   :  { %230 = vperm.xlu2 %816, %v172_v14   ;;  %545 = vmatpush.bf16.msra.mxu0 %v743_v44 }
  0x24   :  { %200 = vperm.xlu0 %814, %v162_v15   ;;  %807 = vmatpush.bf16.msra.mxu1 %v743_v44  ;;  %v114_v15 = vmul.f32 0.01, %v82_v7 }
  0x25   :  { %808 = vmatpush.bf16.msra.mxu2 %v743_v44  ;;  %809 = vmatpush.bf16.msra.mxu3 %v743_v44 }
  0x27   :  { %546 = vmatpush.bf16.msra.mxu0 %v742_v46 }
  0x28   :  { %810 = vmatpush.bf16.msra.mxu1 %v742_v46 }
  0x29   :  { %811 = vmatpush.bf16.msra.mxu2 %v742_v46  ;;  %812 = vmatpush.bf16.msra.mxu3 %v742_v46 }
  0x2a   :  { %330 = vperm.xlu1 %815, %v178_v16  }
  0x2b   :  { %333 = vperm.xlu2 %816, %v179_v17   ;;  %v761_v17 = vunpack.c.h.bf16 %v783_v5 }
  0x2c   :  { %233 = vperm.xlu0 %814, %v173_v18   ;;  %v768_v18 = vunpack.c.l.bf16 %v785_v13 }
  0x2d   :  { %v67_v29 = vmul.f32 %v1006_v58, %v761_v17 }
  0x2f   :  { %v87_v38 = vadd.f32 %v1019_v63, %v67_v29 }
  0x31   :  { %v119_v52 = vmul.f32 0.01, %v87_v38 }
  0x32   :  { %363 = vperm.xlu1 %815, %v189_v19   ;;  %v769_v19 = vunpack.c.h.bf16 %v785_v13 }
  0x33   :  { %212 = vperm.xlu2 %816, %v166_v20  }
  0x34   :  { %360 = vperm.xlu0 %814, %v188_v21   ;;  %v71_v32 = vmul.f32 %v1006_v58, %v769_v19 }
  0x36   :  { %v91_v42 = vadd.f32 %v1019_v63, %v71_v32 }
  0x3a   :  { %224 = vperm.xlu1 %815, %v170_v22   ;;  %v131_v22 = vsel %vm99_vm0, %v83_v4, %v115_v12 }
  0x3b   :  { %227 = vperm.xlu2 %816, %v171_v23   ;;  %v66_v23 = vmul.f32 %v1006_v58, %v760_v9  ;;  %v65_v9 = vmul.f32 %v1006_v58, %v757_v62 }
  0x3c   :  { %215 = vperm.xlu0 %814, %v167_v24  }
  0x3d   :  { %v86_v36 = vadd.f32 %v1019_v63, %v66_v23  ;;  %v85_v19 = vadd.f32 %v1019_v63, %v65_v9 }
  0x3f   :  { %v118_v49 = vmul.f32 0.01, %v86_v36 }
  0x42   :  { %345 = vperm.xlu1 %815, %v183_v25  }
  0x43   :  { %354 = vperm.xlu2 %816, %v186_v26  }
  0x44   :  { %342 = vperm.xlu0 %814, %v182_v27   ;;  %v130_v27 = vsel %vm98_vm1, %v82_v7, %v114_v15  ;;  %v787_v15 = vld [vmem:[%s1349_s0 + $0x30] sm:$0xff]  }
  0x4a   :  { %236 = vperm.xlu1 %815, %v174_v28  }
  0x4b   :  { %239 = vperm.xlu2 %816, %v175_v30  }
  0x4c   :  { %357 = vperm.xlu0 %814, %v187_v31   ;;  %v70_v31 = vmul.f32 %v1006_v58, %v768_v18 }
  0x52   :  { %369 = vperm.xlu1 %815, %v191_v33  }
  0x54   :  { %366 = vperm.xlu0 %814, %v190_v35  }
  0x5d   :  { %v207_v41 = vpop.permute.xlu2 %206 }
  0x5e   :  { %v245_v0 = vadd.s32 %v207_v41, %v991_v45  ;;  %v90_v41 = vadd.f32 %v1019_v63, %v70_v31 }
  0x60   :  { %vm261_vm9 = vcmp.ge.s32.totalorder %v245_v0, 1  ;;  %v122_v55 = vmul.f32 0.01, %v90_v41 }
  0x61   :  { %vm1036_vm13 = vmand %vm1353_vm4, %vm261_vm9 }
  0x65   :  { %v210_v47 = vpop.permute.xlu2 %209 }
  0x66   :  { %v246_v10 = vadd.s32 %v210_v47, %v991_v45 }
  0x6d   :  { %v337_v50 = vpop.permute.xlu2 %336 }
  0x6e   :  { %v375_v24 = vadd.s32 %v337_v50, %v1008_v59 }
  0x74   :  { %v325_v54 = vpop.permute.xlu1 %324 }
  0x75   :  { %v371_v1 = vadd.s32 %v325_v54, %v1008_v59  ;;  %v352_v2 = vpop.permute.xlu2 %351  ;;  %v1366_v54 = vmov 0 }
  0x76   :  { %v195_v56 = vpop.permute.xlu0 %194  ;;  %v380_v34 = vadd.s32 %v352_v2, %v1008_v59 }
  0x77   :  { %v241_v60 = vadd.s32 %v195_v56, %v991_v45  ;;  %vm387_vm10 = vcmp.ge.s32.totalorder %v371_v1, 1  ;;  %vm419_vm14 = vcmp.le.s32.totalorder %v371_v1, 8  ;;  %v123_v56 = vmul.f32 0.01, %v91_v42 }
  0x79   :  { %vm257_vm5 = vcmp.ge.s32.totalorder %v241_v60, 1  ;;  %vm291_vm7 = vcmp.le.s32.totalorder %v241_v60, 8 }
  0x7a   :  { %vm275_vm6 = vmand %vm1353_vm4, %vm257_vm5  ;;  %vm262_vm5 = vcmp.ge.s32.totalorder %v246_v10, 1 }
  0x7b   :  { %vm307_vm8 = vmand %vm275_vm6, %vm291_vm7 }
  0x7c   :  { %v328_v3 = vpop.permute.xlu1 %327  ;;  %vm403_vm11 = vmand %vm307_vm8, %vm387_vm10  ;;  %vm295_vm10 = vcmp.le.s32.totalorder %v245_v0, 8 }
  0x7d   :  { %v372_v11 = vadd.s32 %v328_v3, %v1008_v59  ;;  %vm1040_vm2 = vmand %vm403_vm11, %vm419_vm14  ;;  %v1046_v20 = vpop.permute.xlu2 %230  ;;  %vm296_vm11 = vcmp.le.s32.totalorder %v246_v10, 8 }
  0x7e   :  { %v198_v6 = vpop.permute.xlu0 %197  ;;  %vm280_vm14 = vmand %vm1353_vm4, %vm262_vm5  ;;  %v451_v33 = vsel %vm1040_vm2, %v130_v27, 0.0  ;;  %vm423_vm2 = vcmp.le.s32.totalorder %v375_v24, 8  ;;  %v117_v27 = vmul.f32 0.01, %v85_v19 }
  0x7f   :  { %v242_v8 = vadd.s32 %v198_v6, %v991_v45  ;;  %vm388_vm6 = vcmp.ge.s32.totalorder %v372_v11, 1  ;;  %vm420_vm8 = vcmp.le.s32.totalorder %v372_v11, 8  ;;  %vm1068_vm5 = vmand %vm280_vm14, %vm296_vm11 }
  0x81   :  { %vm258_vm12 = vcmp.ge.s32.totalorder %v242_v8, 1  ;;  %vm292_vm15 = vcmp.le.s32.totalorder %v242_v8, 8  ;;  %v64_v8 = vmul.f32 %v1006_v58, %v756_v61 }
  0x82   :  { %vm276_vm3 = vmand %vm1353_vm4, %vm258_vm12 }
  0x83   :  { %vm308_vm7 = vmand %vm276_vm3, %vm292_vm15  ;;  %v84_v18 = vadd.f32 %v1019_v63, %v64_v8 }
  0x84   :  { %v222_v21 = vpop.permute.xlu1 %221  ;;  %vm404_vm9 = vmand %vm308_vm7, %vm388_vm6  ;;  %vm391_vm6 = vcmp.ge.s32.totalorder %v375_v24, 1 }
  0x85   :  { %v250_v25 = vadd.s32 %v222_v21, %v991_v45  ;;  %vm436_vm12 = vmand %vm404_vm9, %vm420_vm8  ;;  %vm396_vm9 = vcmp.ge.s32.totalorder %v380_v34, 1  ;;  %v334_v50 = vpop.permute.xlu2 %333  ;;  %v776_v21 = vunpack.c.l.bf16 %v787_v15 }
  0x86   :  { %v219_v26 = vpop.permute.xlu0 %218  ;;  %v452_v30 = vsel %vm436_vm12, %v131_v22, 0.0  ;;  %vm311_vm3 = vmand %vm1036_vm13, %vm295_vm10  ;;  %vm102_vm12 = vcmp.ge.f32.partialorder %v86_v36, 0.0  ;;  %v374_v17 = vadd.s32 %v334_v50, %v1008_v59  ;;  %v777_v22 = vunpack.c.h.bf16 %v787_v15 }
  0x87   :  { %v249_v28 = vadd.s32 %v219_v26, %v991_v45  ;;  %vm266_vm15 = vcmp.ge.s32.totalorder %v250_v25, 1  ;;  %vm300_vm1 = vcmp.le.s32.totalorder %v250_v25, 8  ;;  %v467_v35 = vpack.c.bf16 %v452_v30, %v451_v33  ;;  %vm1079_vm13 = vmand %vm311_vm3, %vm391_vm6 }
  0x88   :  { %vm284_vm0 = vmand %vm1353_vm4, %vm266_vm15  ;;  %vm428_vm3 = vcmp.le.s32.totalorder %v380_v34, 8  ;;  %v134_v57 = vsel %vm102_vm12, %v86_v36, %v118_v49  ;;  %v116_v26 = vmul.f32 0.01, %v84_v18  ;;  %v74_v29 = vmul.f32 %v1006_v58, %v776_v21 }
  0x89   :  { %vm265_vm7 = vcmp.ge.s32.totalorder %v249_v28, 1  ;;  %vm1073_vm8 = vmand %vm284_vm0, %vm300_vm1  ;;  %547 = vmatmul.bf16.vlgmr.msra.gmra.mxu0 %v467_v35  ;;  %vm299_vm11 = vcmp.le.s32.totalorder %v249_v28, 8  ;;  %v253_v28 = vadd.s32 %v1046_v20, %v991_v45  ;;  %v75_v31 = vmul.f32 %v1006_v58, %v777_v22 }
  0x8a   :  { %vm1085_vm10 = vmand %vm1353_vm4, %vm265_vm7  ;;  %v94_v20 = vadd.f32 %v1019_v63, %v74_v29  ;;  %v765_v49 = vunpack.c.h.bf16 %v784_v40 }
  0x8b   :  { %vm412_vm14 = vmand %vm1073_vm8, %vm396_vm9  ;;  %vm106_vm8 = vcmp.ge.f32.partialorder %v90_v41, 0.0  ;;  %vm107_vm9 = vcmp.ge.f32.partialorder %v91_v42, 0.0  ;;  %v95_v35 = vadd.f32 %v1019_v63, %v75_v31 }
  0x8c   :  { %v349_v44 = vpop.permute.xlu1 %348  ;;  %vm1099_vm1 = vmand %vm1079_vm13, %vm423_vm2  ;;  %v138_v1 = vsel %vm106_vm8, %v90_v41, %v122_v55  ;;  %v139_v2 = vsel %vm107_vm9, %v91_v42, %v123_v56  ;;  %vm390_vm9 = vcmp.ge.s32.totalorder %v374_v17, 1  ;;  %v126_v46 = vmul.f32 0.01, %v94_v20 }
  0x8d   :  { %v379_v47 = vadd.s32 %v349_v44, %v1008_v59  ;;  %v1367_v54 = vsel %vm1099_vm1, 4294967295, %v1366_v54  ;;  %vm315_vm6 = vmand %vm1085_vm10, %vm299_vm11  ;;  %vm1370_vm1 = vcmp.ge.f32.partialorder %v87_v38, 0.0  ;;  %v1125_v16 = vpop.permute.xlu2 %212  ;;  %v69_v62 = vmul.f32 %v1006_v58, %v765_v49 }
  0x8e   :  { %v340_v48 = vpop.permute.xlu0 %339  ;;  %vm1106_vm0 = vmand %vm412_vm14, %vm428_vm3  ;;  %v135_v0 = vsel %vm1370_vm1, %v87_v38, %v119_v52  ;;  %vm1371_vm12 = vnez %v1367_v54  ;;  %v786_v54 = vld [vmem:[%s1349_s0 + $0x28] sm:$0xff]  }
  0x8f   :  { %v376_v51 = vadd.s32 %v340_v48, %v1008_v59  ;;  %vm395_vm15 = vcmp.ge.s32.totalorder %v379_v47, 1  ;;  %vm427_vm2 = vcmp.le.s32.totalorder %v379_v47, 8  ;;  %v455_v4 = vsel %vm1371_vm12, %v134_v57, 0.0 }
  0x90   :  { %vm411_vm13 = vmand %vm315_vm6, %vm395_vm15  ;;  %v460_v13 = vsel %vm1106_vm0, %v139_v2, 0.0  ;;  %v127_v47 = vmul.f32 0.01, %v95_v35  ;;  %v764_v48 = vunpack.c.l.bf16 %v784_v40  ;;  %v772_v2 = vunpack.c.l.bf16 %v786_v54 }
  0x91   :  { %vm392_vm7 = vcmp.ge.s32.totalorder %v376_v51, 1  ;;  %vm424_vm4 = vcmp.le.s32.totalorder %v376_v51, 8  ;;  %vm443_vm14 = vmand %vm411_vm13, %vm427_vm2  ;;  %vm100_vm13 = vcmp.ge.f32.partialorder %v84_v18, 0.0  ;;  %vm101_vm2 = vcmp.ge.f32.partialorder %v85_v19, 0.0 }
  0x92   :  { %vm408_vm10 = vmand %vm1068_vm5, %vm392_vm7  ;;  %v459_v12 = vsel %vm443_vm14, %v138_v1, 0.0  ;;  %vm1372_vm5 = vcmp.lt.s32.totalorder %v979_v39, 72  ;;  %vm422_vm14 = vcmp.le.s32.totalorder %v374_v17, 8  ;;  %v132_v32 = vsel %vm100_vm13, %v84_v18, %v116_v26  ;;  %v788_v18 = vld [vmem:[%s1349_s0 + $0x38] sm:$0xff]  }
  0x93   :  { %vm440_vm11 = vmand %vm408_vm10, %vm424_vm4  ;;  %v471_v14 = vpack.c.bf16 %v460_v13, %v459_v12  ;;  %v133_v33 = vsel %vm101_vm2, %v85_v19, %v117_v27  ;;  %v247_v51 = vadd.s32 %v1125_v16, %v991_v45  ;;  %v68_v53 = vmul.f32 %v1006_v58, %v764_v48 }
  0x94   :  { %v204_v3 = vpop.permute.xlu1 %203  ;;  %v456_v7 = vsel %vm440_vm11, %v135_v0, 0.0  ;;  %vm1373_vm6 = vmmov %vm1372_vm5  ;;  %v780_v27 = vunpack.c.l.bf16 %v788_v18 }
  0x95   :  { %v244_v5 = vadd.s32 %v204_v3, %v991_v45  ;;  %v469_v11 = vpack.c.bf16 %v456_v7, %v455_v4  ;;  %567 = vmatmul.bf16.vlgmr.msra.gmra.mxu2 %v471_v14  ;;  %v1140_v34 = vpop.permute.xlu2 %227  ;;  %v88_v4 = vadd.f32 %v1019_v63, %v68_v53  ;;  %v72_v7 = vmul.f32 %v1006_v58, %v772_v2 }
  0x96   :  { %v201_v6 = vpop.permute.xlu0 %200  ;;  %v252_v14 = vadd.s32 %v1140_v34, %v991_v45 }
  0x97   :  { %v243_v10 = vadd.s32 %v201_v6, %v991_v45  ;;  %vm260_vm4 = vcmp.ge.s32.totalorder %v244_v5, 1  ;;  %vm294_vm1 = vcmp.le.s32.totalorder %v244_v5, 8  ;;  %557 = vmatmul.bf16.vlgmr.msra.gmra.mxu1 %v469_v11  ;;  %v773_v5 = vunpack.c.h.bf16 %v786_v54 }
  0x98   :  { %vm278_vm15 = vmand %vm1372_vm5, %vm260_vm4  ;;  %v89_v6 = vadd.f32 %v1019_v63, %v69_v62  ;;  %v120_v9 = vmul.f32 0.01, %v88_v4 }
  0x99   :  { %vm259_vm3 = vcmp.ge.s32.totalorder %v243_v10, 1  ;;  %vm310_vm0 = vmand %vm278_vm15, %vm294_vm1  ;;  %vm293_vm8 = vcmp.le.s32.totalorder %v243_v10, 8  ;;  %vm269_vm1 = vcmp.ge.s32.totalorder %v253_v28, 1  ;;  %v73_v10 = vmul.f32 %v1006_v58, %v773_v5 }
  0x9a   :  { %vm277_vm7 = vmand %vm1373_vm6, %vm259_vm3  ;;  %v121_v17 = vmul.f32 0.01, %v89_v6 }
  0x9b   :  { %vm406_vm10 = vmand %vm310_vm0, %vm390_vm9  ;;  %v93_v26 = vadd.f32 %v1019_v63, %v73_v10 }
  0x9c   :  { %v331_v23 = vpop.permute.xlu1 %330  ;;  %vm309_vm11 = vmand %vm277_vm7, %vm293_vm8  ;;  %vm303_vm8 = vcmp.le.s32.totalorder %v253_v28, 8 }
  0x9d   :  { %v373_v24 = vadd.s32 %v331_v23, %v1008_v59  ;;  %vm438_vm15 = vmand %vm406_vm10, %vm422_vm14  ;;  %v355_v55 = vpop.permute.xlu2 %354  ;;  %v92_v23 = vadd.f32 %v1019_v63, %v72_v7 }
  0x9e   :  { %v234_v25 = vpop.permute.xlu0 %233  ;;  %v454_v38 = vsel %vm438_vm15, %v133_v33, 0.0  ;;  %vm287_vm7 = vmand %vm1373_vm6, %vm269_vm1 }
  0x9f   :  { %vm389_vm12 = vcmp.ge.s32.totalorder %v373_v24, 1  ;;  %v254_v30 = vadd.s32 %v234_v25, %v991_v45  ;;  %vm421_vm5 = vcmp.le.s32.totalorder %v373_v24, 8  ;;  %vm1374_vm9 = vmmov %vm1373_vm6  ;;  %v381_v24 = vadd.s32 %v355_v55, %v1008_v59 }
  0xa0   :  { %vm405_vm4 = vmand %vm309_vm11, %vm389_vm12  ;;  %vm110_vm11 = vcmp.ge.f32.partialorder %v94_v20, 0.0 }
  0xa1   :  { %vm270_vm3 = vcmp.ge.s32.totalorder %v254_v30, 1  ;;  %vm437_vm0 = vmand %vm405_vm4, %vm421_vm5  ;;  %vm304_vm2 = vcmp.le.s32.totalorder %v254_v30, 8  ;;  %vm111_vm4 = vcmp.ge.f32.partialorder %v95_v35, 0.0  ;;  %v142_v50 = vsel %vm110_vm11, %v94_v20, %v126_v46 }
  0xa2   :  { %v453_v37 = vsel %vm437_vm0, %v132_v32, 0.0  ;;  %vm288_vm13 = vmand %vm1374_vm9, %vm270_vm3  ;;  %v143_v52 = vsel %vm111_vm4, %v95_v35, %v127_v47  ;;  %vm297_vm11 = vcmp.le.s32.totalorder %v247_v51, 8  ;;  %v781_v30 = vunpack.c.h.bf16 %v788_v18 }
  0xa3   :  { %v468_v43 = vpack.c.bf16 %v454_v38, %v453_v37  ;;  %vm319_vm12 = vmand %vm287_vm7, %vm303_vm8  ;;  %vm263_vm8 = vcmp.ge.s32.totalorder %v247_v51, 1  ;;  %v124_v32 = vmul.f32 0.01, %v92_v23  ;;  %v125_v35 = vmul.f32 0.01, %v93_v26 }
  0xa4   :  { %v364_v36 = vpop.permute.xlu1 %363  ;;  %vm320_vm5 = vmand %vm288_vm13, %vm304_vm2  ;;  %vm1375_vm2 = vcmp.lt.s32.totalorder %v979_v39, 72 }
  0xa5   :  { %v384_v41 = vadd.s32 %v364_v36, %v1008_v59  ;;  %552 = vmatmul.bf16.gmra.mxu0 %v468_v43  ;;  %v240_v19 = vpop.permute.xlu2 %239  ;;  %v76_v36 = vmul.f32 %v1006_v58, %v780_v27 }
  0xa6   :  { %v361_v42 = vpop.permute.xlu0 %360  ;;  %v256_v28 = vadd.s32 %v240_v19, %v991_v45 }
  0xa7   :  { %v383_v44 = vadd.s32 %v361_v42, %v1008_v59  ;;  %vm400_vm10 = vcmp.ge.s32.totalorder %v384_v41, 1  ;;  %vm432_vm0 = vcmp.le.s32.totalorder %v384_v41, 8  ;;  %v77_v41 = vmul.f32 %v1006_v58, %v781_v30 }
  0xa8   :  { %vm416_vm1 = vmand %vm320_vm5, %vm400_vm10  ;;  %v96_v58 = vadd.f32 %v1019_v63, %v76_v36 }
  0xa9   :  { %vm399_vm14 = vcmp.ge.s32.totalorder %v383_v44, 1  ;;  %vm431_vm15 = vcmp.le.s32.totalorder %v383_v44, 8  ;;  %vm448_vm7 = vmand %vm416_vm1, %vm432_vm0  ;;  %vm104_vm0 = vcmp.ge.f32.partialorder %v88_v4, 0.0  ;;  %v97_v46 = vadd.f32 %v1019_v63, %v77_v41 }
  0xaa   :  { %vm415_vm3 = vmand %vm319_vm12, %vm399_vm14  ;;  %v464_v1 = vsel %vm448_vm7, %v143_v52, 0.0  ;;  %vm105_vm7 = vcmp.ge.f32.partialorder %v89_v6, 0.0  ;;  %v136_v25 = vsel %vm104_vm0, %v88_v4, %v120_v9 }
  0xab   :  { %vm447_vm6 = vmand %vm415_vm3, %vm431_vm15  ;;  %v137_v29 = vsel %vm105_vm7, %v89_v6, %v121_v17  ;;  %vm108_vm7 = vcmp.ge.f32.partialorder %v92_v23, 0.0  ;;  %v129_v54 = vmul.f32 0.01, %v97_v46 }
  0xac   :  { %v225_v56 = vpop.permute.xlu1 %224  ;;  %v463_v61 = vsel %vm447_vm6, %v142_v50, 0.0  ;;  %vm281_vm10 = vmand %vm1375_vm2, %vm263_vm8  ;;  %v140_v43 = vsel %vm108_vm7, %v92_v23, %v124_v32  ;;  %v128_v50 = vmul.f32 0.01, %v96_v58  ;;  %vm112_vm7 = vcmp.ge.f32.partialorder %v96_v58, 0.0 }
  0xad   :  { %v251_v57 = vadd.s32 %v225_v56, %v991_v45  ;;  %v473_v3 = vpack.c.bf16 %v464_v1, %v463_v61  ;;  %vm1376_vm12 = vmmov %vm1375_vm2 }
  0xae   :  { %v216_v60 = vpop.permute.xlu0 %215  ;;  %vm1379_vm5 = vmmov %vm1375_vm2 }
  0xaf   :  { %v248_v0 = vadd.s32 %v216_v60, %v991_v45  ;;  %vm267_vm9 = vcmp.ge.s32.totalorder %v251_v57, 1  ;;  %577 = vmatmul.bf16.vlgmr.msra.gmra.mxu3 %v473_v3  ;;  %vm301_vm4 = vcmp.le.s32.totalorder %v251_v57, 8  ;;  %vm1180_vm3 = vmand %vm281_vm10, %vm297_vm11 }
  0xb0   :  { %vm1169_vm14 = vmand %vm1376_vm12, %vm267_vm9  ;;  %vm268_vm12 = vcmp.ge.s32.totalorder %v252_v14, 1 }
  0xb1   :  { %vm264_vm13 = vcmp.ge.s32.totalorder %v248_v0, 1  ;;  %vm298_vm1 = vcmp.le.s32.totalorder %v248_v0, 8  ;;  %vm1192_vm6 = vmand %vm1169_vm14, %vm301_vm4 }
  0xb2   :  { %vm1176_vm15 = vmand %vm1379_vm5, %vm264_vm13  ;;  %vm302_vm5 = vcmp.le.s32.totalorder %v252_v14, 8 }
  0xb3   :  { %vm314_vm8 = vmand %vm1176_vm15, %vm298_vm1  ;;  %vm1386_vm1 = vcmp.lt.s32.totalorder %v979_v39, 72  ;;  %v144_v39 = vsel %vm112_vm7, %v96_v58, %v128_v50 }
  0xb4   :  { %v346_v12 = vpop.permute.xlu1 %345  ;;  %vm1209_vm0 = vmand %vm1386_vm1, %vm268_vm12 }
  0xb5   :  { %v378_v15 = vadd.s32 %v346_v12, %v1008_v59 }
  0xb6   :  { %v343_v16 = vpop.permute.xlu0 %342 }
  0xb7   :  { %v377_v22 = vadd.s32 %v343_v16, %v1008_v59  ;;  %vm394_vm9 = vcmp.ge.s32.totalorder %v378_v15, 1  ;;  %vm426_vm2 = vcmp.le.s32.totalorder %v378_v15, 8 }
  0xb8   :  { %vm410_vm13 = vmand %vm314_vm8, %vm394_vm9  ;;  %vm397_vm8 = vcmp.ge.s32.totalorder %v381_v24, 1  ;;  %vm109_vm9 = vcmp.ge.f32.partialorder %v93_v26, 0.0 }
  0xb9   :  { %vm393_vm10 = vcmp.ge.s32.totalorder %v377_v22, 1  ;;  %vm425_vm11 = vcmp.le.s32.totalorder %v377_v22, 8  ;;  %vm442_vm15 = vmand %vm410_vm13, %vm426_vm2  ;;  %v141_v44 = vsel %vm109_vm9, %v93_v26, %v125_v35 }
  0xba   :  { %vm409_vm14 = vmand %vm1180_vm3, %vm393_vm10  ;;  %v458_v20 = vsel %vm442_vm15, %v137_v29, 0.0  ;;  %vm272_vm3 = vcmp.ge.s32.totalorder %v256_v28, 1  ;;  %vm429_vm10 = vcmp.le.s32.totalorder %v381_v24, 8 }
  0xbb   :  { %vm441_vm4 = vmand %vm409_vm14, %vm425_vm11 }
  0xbc   :  { %v457_v31 = vsel %vm441_vm4, %v136_v25, 0.0  ;;  %v237_v34 = vpop.permute.xlu1 %236  ;;  %vm413_vm13 = vmand %vm1192_vm6, %vm397_vm8 }
  0xbd   :  { %v255_v37 = vadd.s32 %v237_v34, %v991_v45  ;;  %v470_v40 = vpack.c.bf16 %v458_v20, %v457_v31  ;;  %vm318_vm2 = vmand %vm1209_vm0, %vm302_vm5  ;;  %vm306_vm5 = vcmp.le.s32.totalorder %v256_v28, 8 }
  0xbe   :  { %v358_v38 = vpop.permute.xlu0 %357  ;;  %vm1389_vm11 = vmmov %vm1386_vm1 }
  0xbf   :  { %v382_v42 = vadd.s32 %v358_v38, %v1008_v59  ;;  %562 = vmatmul.bf16.gmra.mxu1 %v470_v40  ;;  %vm1224_vm12 = vmand %vm1389_vm11, %vm272_vm3  ;;  %vm271_vm15 = vcmp.ge.s32.totalorder %v255_v37, 1 }
  0xc0   :  { %vm445_vm6 = vmand %vm413_vm13, %vm429_vm10  ;;  %vm113_vm13 = vcmp.ge.f32.partialorder %v97_v46, 0.0 }
  0xc1   :  { %vm398_vm14 = vcmp.ge.s32.totalorder %v382_v42, 1  ;;  %vm430_vm4 = vcmp.le.s32.totalorder %v382_v42, 8  ;;  %vm1392_vm8 = vmmov %vm1389_vm11  ;;  %vm305_vm11 = vcmp.le.s32.totalorder %v255_v37, 8  ;;  %v461_v48 = vsel %vm445_vm6, %v140_v43, 0.0 }
  0xc2   :  { %vm414_vm1 = vmand %vm318_vm2, %vm398_vm14  ;;  %v145_v55 = vsel %vm113_vm13, %v97_v46, %v129_v54 }
  0xc3   :  { %vm446_vm0 = vmand %vm414_vm1, %vm430_vm4 }
  0xc4   :  { %vm289_vm3 = vmand %vm1392_vm8, %vm271_vm15  ;;  %v370_v47 = vpop.permute.xlu1 %369  ;;  %v462_v49 = vsel %vm446_vm0, %v141_v44, 0.0 }
  0xc5   :  { %v386_v51 = vadd.s32 %v370_v47, %v1008_v59  ;;  %v472_v53 = vpack.c.bf16 %v462_v49, %v461_v48  ;;  %vm322_vm9 = vmand %vm1224_vm12, %vm306_vm5  ;;  %vm588_vm12 = vcmask 64512   ;;  %vm642_vm5 = vcmask 57344  }
  0xc6   :  { %v367_v52 = vpop.permute.xlu0 %366  ;;  %vm321_vm2 = vmand %vm289_vm3, %vm305_vm11 }
  0xc7   :  { %v385_v63 = vadd.s32 %v367_v52, %v1008_v59  ;;  %vm402_vm10 = vcmp.ge.s32.totalorder %v386_v51, 1  ;;  %572 = vmatmul.bf16.gmra.mxu2 %v472_v53  ;;  %vm434_vm4 = vcmp.le.s32.totalorder %v386_v51, 8 }
  0xc8   :  { %vm418_vm14 = vmand %vm322_vm9, %vm402_vm10 }
  0xc9   :  { %vm401_vm15 = vcmp.ge.s32.totalorder %v385_v63, 1  ;;  %vm433_vm6 = vcmp.le.s32.totalorder %v385_v63, 8  ;;  %vm450_vm8 = vmand %vm418_vm14, %vm434_vm4 }
  0xca   :  { %vm417_vm1 = vmand %vm321_vm2, %vm401_vm15  ;;  %v466_v57 = vsel %vm450_vm8, %v145_v55, 0.0 }
  0xcb   :  { %vm449_vm0 = vmand %vm417_vm1, %vm433_vm6 }
  0xcc   :  { %v465_v56 = vsel %vm449_vm0, %v144_v39, 0.0 }
  0xcd   :  { %v474_v60 = vpack.c.bf16 %v466_v57, %v465_v56 }
  0xcf   :  { %582 = vmatmul.bf16.gmra.mxu3 %v474_v60 }
 0x106   :  { %v548_v61 = vpop.f32.mrf.mxu0 }
 0x107   :  { %589 = vst.msk [vmem:[%s1350_s6] sm:$0xff] %vm588_vm12, %v548_v61  ;;  %v644_v6 = vmul.f32 %v548_v61, %v548_v61  ;;  %v605_v10 = vsel %vm588_vm12, %v548_v61, 0.0 }
 0x109   :  { %v660_v15 = vsel %vm588_vm12, %v644_v6, 0.0 }
 0x10e   :  { %v550_v59 = vpop.f32.mrf.mxu0 }
 0x10f   :  { %590 = vst.msk [vmem:[%s1350_s6 + $0x8] sm:$0xff] %vm588_vm12, %v550_v59  ;;  %v645_v5 = vmul.f32 %v550_v59, %v550_v59  ;;  %v606_v7 = vsel %vm588_vm12, %v550_v59, 0.0 }
 0x110   :  { %v607_v14 = vadd.f32 %v606_v7, %v605_v10 }
 0x111   :  { %v661_v11 = vsel %vm588_vm12, %v645_v5, 0.0 }
 0x112   :  { %v662_v18 = vadd.f32 %v661_v11, %v660_v15 }
 0x114   :  { %v558_v62 = vpop.f32.mrf.mxu1 }
 0x115   :  { %593 = vst.msk [vmem:[%s1350_s6 + $0x20] sm:$0xff] %vm588_vm12, %v558_v62  ;;  %v648_v24 = vmul.f32 %v558_v62, %v558_v62  ;;  %v612_v28 = vsel %vm588_vm12, %v558_v62, 0.0 }
 0x117   :  { %v667_v30 = vsel %vm588_vm12, %v648_v24, 0.0 }
 0x118   :  { %v568_v0 = vpop.f32.mrf.mxu2 }
 0x119   :  { %597 = vst.msk [vmem:[%s1350_s6 + $0x40] sm:$0xff] %vm588_vm12, %v568_v0  ;;  %v652_v44 = vmul.f32 %v568_v0, %v568_v0  ;;  %v620_v48 = vsel %vm588_vm12, %v568_v0, 0.0 }
 0x11b   :  { %v675_v51 = vsel %vm588_vm12, %v652_v44, 0.0 }
 0x11c   :  { %v560_v1 = vpop.f32.mrf.mxu1 }
 0x11d   :  { %594 = vst.msk [vmem:[%s1350_s6 + $0x28] sm:$0xff] %vm588_vm12, %v560_v1  ;;  %v649_v31 = vmul.f32 %v560_v1, %v560_v1  ;;  %v614_v34 = vsel %vm588_vm12, %v560_v1, 0.0 }
 0x11f   :  { %v669_v36 = vsel %vm588_vm12, %v649_v31, 0.0 }
 0x120   :  { %v570_v2 = vpop.f32.mrf.mxu2 }
 0x121   :  { %598 = vst.msk [vmem:[%s1350_s6 + $0x48] sm:$0xff] %vm588_vm12, %v570_v2  ;;  %v653_v52 = vmul.f32 %v570_v2, %v570_v2  ;;  %v622_v54 = vsel %vm588_vm12, %v570_v2, 0.0 }
 0x122   :  { %v553_v3 = vpop.f32.mrf.mxu0 }
 0x123   :  { %591 = vst.msk [vmem:[%s1350_s6 + $0x10] sm:$0xff] %vm588_vm12, %v553_v3  ;;  %v646_v8 = vmul.f32 %v553_v3, %v553_v3  ;;  %v608_v12 = vsel %vm588_vm12, %v553_v3, 0.0  ;;  %v677_v55 = vsel %vm588_vm12, %v653_v52, 0.0 }
 0x124   :  { %v609_v19 = vadd.f32 %v608_v12, %v607_v14 }
 0x125   :  { %v663_v16 = vsel %vm588_vm12, %v646_v8, 0.0 }
 0x126   :  { %v664_v22 = vadd.f32 %v663_v16, %v662_v18 }
 0x12a   :  { %v555_v4 = vpop.f32.mrf.mxu0 }
 0x12b   :  { %592 = vst.msk [vmem:[%s1350_s6 + $0x18] sm:$0xff] %vm588_vm12, %v555_v4  ;;  %v647_v13 = vmul.f32 %v555_v4, %v555_v4  ;;  %v610_v17 = vsel %vm588_vm12, %v555_v4, 0.0 }
 0x12c   :  { %v611_v23 = vadd.f32 %v610_v17, %v609_v19 }
 0x12d   :  { %v665_v21 = vsel %vm588_vm12, %v647_v13, 0.0 }
 0x12e   :  { %v666_v25 = vadd.f32 %v665_v21, %v664_v22  ;;  %v613_v29 = vadd.f32 %v612_v28, %v611_v23 }
 0x130   :  { %v668_v33 = vadd.f32 %v667_v30, %v666_v25  ;;  %v615_v35 = vadd.f32 %v614_v34, %v613_v29 }
 0x132   :  { %v1269_v9 = vpop.f32.mrf.mxu3  ;;  %v670_v40 = vadd.f32 %v669_v36, %v668_v33 }
 0x133   :  { %601 = vst.msk [vmem:[%s1350_s6 + $0x60] sm:$0xff] %vm588_vm12, %v1269_v9  ;;  %v656_v0 = vmul.f32 %v1269_v9, %v1269_v9  ;;  %v628_v5 = vsel %vm588_vm12, %v1269_v9, 0.0 }
 0x135   :  { %v683_v11 = vsel %vm588_vm12, %v656_v0, 0.0 }
 0x13a   :  { %v580_v26 = vpop.f32.mrf.mxu3 }
 0x13b   :  { %602 = vst.msk [vmem:[%s1350_s6 + $0x68] sm:$0xff] %vm588_vm12, %v580_v26  ;;  %v657_v6 = vmul.f32 %v580_v26, %v580_v26  ;;  %v630_v12 = vsel %vm588_vm12, %v580_v26, 0.0 }
 0x13c   :  { %v563_v27 = vpop.f32.mrf.mxu1 }
 0x13d   :  { %595 = vst.msk [vmem:[%s1350_s6 + $0x30] sm:$0xff] %vm588_vm12, %v563_v27  ;;  %v650_v32 = vmul.f32 %v563_v27, %v563_v27  ;;  %v616_v20 = vsel %vm588_vm12, %v563_v27, 0.0  ;;  %v685_v16 = vsel %vm588_vm12, %v657_v6, 0.0 }
 0x13e   :  { %v617_v38 = vadd.f32 %v616_v20, %v615_v35 }
 0x13f   :  { %v671_v37 = vsel %vm588_vm12, %v650_v32, 0.0 }
 0x140   :  { %v672_v58 = vadd.f32 %v671_v37, %v670_v40 }
 0x144   :  { %v565_v41 = vpop.f32.mrf.mxu1 }
 0x145   :  { %596 = vst.msk [vmem:[%s1350_s6 + $0x38] sm:$0xff] %vm588_vm12, %v565_v41  ;;  %v618_v42 = vsel %vm588_vm12, %v565_v41, 0.0  ;;  %v651_v45 = vmul.f32 %v565_v41, %v565_v41 }
 0x146   :  { %v619_v43 = vadd.f32 %v618_v42, %v617_v38 }
 0x147   :  { %v673_v46 = vsel %vm588_vm12, %v651_v45, 0.0 }
 0x148   :  { %v674_v47 = vadd.f32 %v673_v46, %v672_v58  ;;  %v621_v49 = vadd.f32 %v620_v48, %v619_v43 }
 0x14a   :  { %v573_v50 = vpop.f32.mrf.mxu2  ;;  %v676_v53 = vadd.f32 %v675_v51, %v674_v47  ;;  %v623_v39 = vadd.f32 %v622_v54, %v621_v49 }
 0x14b   :  { %599 = vst.msk [vmem:[%s1350_s6 + $0x50] sm:$0xff] %vm588_vm12, %v573_v50  ;;  %v654_v63 = vmul.f32 %v573_v50, %v573_v50  ;;  %v624_v56 = vsel %vm588_vm12, %v573_v50, 0.0 }
 0x14c   :  { %v678_v57 = vadd.f32 %v677_v55, %v676_v53  ;;  %v625_v61 = vadd.f32 %v624_v56, %v623_v39 }
 0x14d   :  { %v679_v60 = vsel %vm588_vm12, %v654_v63, 0.0 }
 0x14e   :  { %v680_v3 = vadd.f32 %v679_v60, %v678_v57 }
 0x152   :  { %v575_v59 = vpop.f32.mrf.mxu2  ;;  %v583_v62 = vpop.f32.mrf.mxu3 }
 0x153   :  { %600 = vst.msk [vmem:[%s1350_s6 + $0x58] sm:$0xff] %vm588_vm12, %v575_v59  ;;  %v626_v1 = vsel %vm588_vm12, %v575_v59, 0.0  ;;  %v655_v2 = vmul.f32 %v575_v59, %v575_v59  ;;  %v658_v13 = vmul.f32 %v583_v62, %v583_v62  ;;  %v632_v17 = vsel %vm588_vm12, %v583_v62, 0.0 }
 0x154   :  { %v627_v4 = vadd.f32 %v626_v1, %v625_v61  ;;  %603 = vst.msk [vmem:[%s1350_s6 + $0x70] sm:$0xff] %vm588_vm12, %v583_v62 }
 0x155   :  { %v681_v7 = vsel %vm588_vm12, %v655_v2, 0.0  ;;  %v687_v9 = vsel %vm588_vm12, %v658_v13, 0.0 }
 0x156   :  { %v629_v8 = vadd.f32 %v628_v5, %v627_v4  ;;  %v682_v10 = vadd.f32 %v681_v7, %v680_v3 }
 0x158   :  { %v684_v14 = vadd.f32 %v683_v11, %v682_v10  ;;  %v631_v15 = vadd.f32 %v630_v12, %v629_v8 }
 0x15a   :  { %v633_v18 = vadd.f32 %v632_v17, %v631_v15  ;;  %v686_v19 = vadd.f32 %v685_v16, %v684_v14  ;;  %v585_v21 = vpop.f32.mrf.mxu3 }
 0x15b   :  { %604 = vst.msk [vmem:[%s1350_s6 + $0x78] sm:$0xff] %vm588_vm12, %v585_v21  ;;  %v634_v22 = vsel %vm588_vm12, %v585_v21, 0.0  ;;  %v659_v23 = vmul.f32 %v585_v21, %v585_v21 }
 0x15c   :  { %v688_v24 = vadd.f32 %v687_v9, %v686_v19  ;;  %v635_v25 = vadd.f32 %v634_v22, %v633_v18 }
 0x15d   :  { %v689_v26 = vsel %vm588_vm12, %v659_v23, 0.0 }
 0x15e   :  { %v636_v27 = vrot.slane %v635_v25, 4  ;;  %v690_v28 = vadd.f32 %v689_v26, %v688_v24 }
 0x160   :  { %v637_v29 = vadd.f32 %v636_v27, %v635_v25  ;;  %v691_v30 = vrot.slane %v690_v28, 4 }
 0x162   :  { %v638_v31 = vrot.slane %v637_v29, 2  ;;  %v692_v32 = vadd.f32 %v691_v30, %v690_v28 }
 0x164   :  { %v639_v33 = vadd.f32 %v638_v31, %v637_v29  ;;  %v693_v34 = vrot.slane %v692_v32, 2 }
 0x166   :  { %v640_v20 = vrot.slane %v639_v33, 1  ;;  %v694_v35 = vadd.f32 %v693_v34, %v692_v32 }
 0x168   :  { %v641_v36 = vadd.f32 %v640_v20, %v639_v33  ;;  %v695_v37 = vrot.slane %v694_v35, 1 }
 0x16a   :  { %643 = vst.msk [vmem:[%s1351_s7] sm:$0x1] %vm642_vm5, %v641_v36  ;;  %v696_v38 = vadd.f32 %v695_v37, %v694_v35 }
 0x16c   :  { %697 = vst.msk [vmem:[%s1352_s8] sm:$0x1] %vm642_vm5, %v696_v38 }

</bundles_post_ra>
